<compile_context>
chip_gen: v5e
topology: v5e:2x2
jax: 0.10.0
libtpu: 0.0.40
codegen_flags: <defaults>
</compile_context>

<pallas_src>
import jax
import jax.numpy as jnp
import numpy as np
from jax.experimental import pallas as pl
from jax.experimental.pallas import tpu as pltpu

K = 10       # fixed in the module
_LANE = 128  # TPU lane width


def _round_up(a, b):
    return ((a + b - 1) // b) * b


def _orth_sgnn_kernel(w_ref, s2_hbm, x_ref, o_ref, s2_vmem, acc_ref):
    """One feature tile of the K-tap Chebyshev filter.

    w_ref   : SMEM (K+1,) f32     folded per-tap coefficients
    s2_hbm  : ANY  (Np, Np) bf16  2 * normalized adjacency (raw HBM ref)
    x_ref   : VMEM (Np, TF) f32   feature tile (P0)
    o_ref   : VMEM (Np, TF) f32   output tile
    s2_vmem : VMEM (Np, Np) bf16  single-buffered copy of S2
    acc_ref : VMEM (Np, TF) f32   accumulator scratch
    """
    # Single-buffered S2: one explicit copy instead of the auto-pipeline's two
    # buffers (halves the adjacency's VMEM footprint; matters on v7x's 64 MiB).
    # Copied unconditionally each grid step so it stays correct when the
    # "parallel" feature axis is sharded across TensorCores (megacore).
    pltpu.sync_copy(s2_hbm, s2_vmem)
    s2 = s2_vmem[...]                      # bf16 MXU operand
    x = x_ref[...]                         # f32

    # P1 = S x = 0.5 * (S2 x); MXU inputs bf16, accumulation in f32.
    s2x = jnp.dot(s2, x.astype(jnp.bfloat16), preferred_element_type=jnp.float32)
    p_prev = x                             # P0 (f32)
    p_curr = 0.5 * s2x                     # P1 (f32)
    acc_ref[...] = w_ref[0] * p_prev + w_ref[1] * p_curr

    # Chebyshev recurrence with An=2 pre-folded: P_i = S2 @ P_{i-1} - P_{i-2}.
    # K is small and static -> unrolled straight-line MXU code.
    # (Further option for tiny TF: interleave two independent feature sub-tile
    #  chains to hide the serial-dependency MXU drain; not needed at TF>=128.)
    for i in range(2, K + 1):
        p_next = jnp.dot(s2, p_curr.astype(jnp.bfloat16),
                         preferred_element_type=jnp.float32) - p_prev
        acc_ref[...] = acc_ref[...] + w_ref[i] * p_next
        p_prev, p_curr = p_curr, p_next

    o_ref[...] = acc_ref[...].astype(o_ref.dtype)


def orth_sgnn_forward(S, x, w, *, tf=256):
    """S: (N, N) f32 normalized adjacency, x: (N, F) f32, w: (K+1,) f32."""
    N, F = x.shape

    # ---- lane-dense padding / tiling ----
    Np = _round_up(N, _LANE)               # contraction dim, full MXU passes
    Fp = _round_up(F, _LANE)               # lane-dense feature dim
    tf = min(max(_LANE, _round_up(tf, _LANE)), Fp)
    # Prefer >= 2 feature tiles when F allows, so v7x's 2nd TensorCore gets work.
    if Fp // tf < 2 and Fp >= 2 * _LANE:
        tf = _round_up(Fp // 2, _LANE)
    Fp = _round_up(Fp, tf)                 # exact multiple -> no remainder tile
    grid = (pl.cdiv(Fp, tf),)

    # Fold the Chebyshev An=2 into the adjacency once; bf16 for the MXU.
    s2 = jnp.zeros((Np, Np), jnp.bfloat16).at[:N, :N].set(
        (2.0 * S).astype(jnp.bfloat16))
    xp = jnp.zeros((Np, Fp), jnp.float32).at[:N, :F].set(x.astype(jnp.float32))
    w = w.astype(jnp.float32)

    # ---- explicit scoped-VMEM budget ----
    est = (Np * Np * 2            # single-buffered bf16 S2 scratch
           + Np * tf * 4          # f32 accumulator scratch
           + 2 * Np * tf * 4      # double-buffered x tile
           + 2 * Np * tf * 4      # double-buffered o tile
           + 4 * Np * tf * 4)     # live P_i / bf16-cast temporaries
    vmem_limit = int(min(max(est * 1.3, 16 * 2**20), 100 * 2**20))

    out = pl.pallas_call(
        _orth_sgnn_kernel,
        out_shape=jax.ShapeDtypeStruct((Np, Fp), jnp.float32),
        grid=grid,
        in_specs=[
            pl.BlockSpec(memory_space=pltpu.MemorySpace.SMEM),  # w (scalars)
            pl.BlockSpec(memory_space=pl.ANY),                  # S2, raw HBM ref
            pl.BlockSpec((Np, tf), lambda j: (0, j)),           # x tile
        ],
        out_specs=pl.BlockSpec((Np, tf), lambda j: (0, j)),
        scratch_shapes=[
            pltpu.VMEM((Np, Np), jnp.bfloat16),                 # S2 single buffer
            pltpu.VMEM((Np, tf), jnp.float32),                  # accumulator
        ],
        compiler_params=pltpu.CompilerParams(
            dimension_semantics=("parallel",),
            vmem_limit_bytes=vmem_limit),
    )(w, s2, xp)

    return out[:N, :F].astype(x.dtype)


def _reference_forward_f32(S, x, w):
    """Pure f32 reference of the OrthSGNN forward (module semantics)."""
    P = [x, S @ x]
    for _ in range(2, K + 1):
        P.append(2.0 * (S @ P[-1]) - P[-2])
    out = jnp.zeros_like(x)
    for i in range(K + 1):
        out = out + w[i] * P[i]
    return out


def _reference_forward_mixed(S, x, w):
    """Same precision schedule as the kernel: bf16 MXU inputs, f32 accumulation."""
    s2 = (2.0 * S).astype(jnp.bfloat16)
    s2x = jnp.dot(s2, x.astype(jnp.bfloat16), preferred_element_type=jnp.float32)
    p_prev = x.astype(jnp.float32)
    p_curr = 0.5 * s2x
    acc = w[0] * p_prev + w[1] * p_curr
    for i in range(2, K + 1):
        p_next = jnp.dot(s2, p_curr.astype(jnp.bfloat16),
                         preferred_element_type=jnp.float32) - p_prev
        acc = acc + w[i] * p_next
        p_prev, p_curr = p_curr, p_next
    return acc


if __name__ == "__main__":
    key = jax.random.PRNGKey(0)
    N, F = 32, 16  # small synthetic graph: 32 nodes, 16 features
    alpha = 2.0    # args.alpha, coef_upd = 'none'

    k_adj, k_x = jax.random.split(key)

    # --- synthetic undirected graph, no self loops (glue, plain JAX) ---
    upper = (jax.random.uniform(k_adj, (N, N)) < 0.2).astype(jnp.float32)
    upper = jnp.triu(upper, k=1)
    A = upper + upper.T                                    # symmetric 0/1 adjacency
    deg = jnp.sum(A, axis=1)
    dinv = jnp.where(deg > 0, 1.0 / jnp.sqrt(deg), 0.0)
    S = dinv[:, None] * A * dinv[None, :]                  # gcn_norm, add_self_loops=False

    x = jax.random.normal(k_x, (N, F), dtype=jnp.float32)  # data.x_tmp

    # --- deterministic parameter init (matches module __init__) ---
    lap_coefs = jnp.full((K + 1,), min(1.0 / alpha, 1.0), dtype=jnp.float32)
    norm_weights = jnp.ones((K + 1,), dtype=jnp.float32)
    mf_weights = jnp.ones((1, K + 1, 1), dtype=jnp.float32)

    # coefs_trans(mode='none') returns lap_coefs unchanged.
    # Fold lap_coefs / norm_weights / mf_weights into one coefficient per tap.
    w = jnp.concatenate(
        [jnp.array([1.0 / norm_weights[0]], dtype=jnp.float32),
         lap_coefs[:K] / norm_weights[1:]]) * mf_weights[0, :, 0]

    out = jax.block_until_ready(orth_sgnn_forward(S, x, w))

    # 1) logic check against a JAX reference with the same mixed precision
    ref_mixed = _reference_forward_mixed(S, x, w)
    np.testing.assert_allclose(np.asarray(out), np.asarray(ref_mixed),
                               rtol=1e-2, atol=1e-2)
    # 2) numerics sanity check against the full-f32 module semantics
    ref_f32 = _reference_forward_f32(S, x, w)
    np.testing.assert_allclose(np.asarray(out), np.asarray(ref_f32),
                               rtol=5e-2, atol=5e-2)

    print("KERNEL_OK")
</pallas_src>

<mosaic_0001>
module attributes {stable_mosaic.version = 11 : i64} {
  func.func @_orth_sgnn_kernel(%arg0: i32, %arg1: memref<11xf32, #tpu.memory_space<smem>>, %arg2: memref<128x128xbf16, #tpu.memory_space<any>>, %arg3: memref<128x128xf32, #tpu.memory_space<vmem>>, %arg4: memref<128x128xf32, #tpu.memory_space<vmem>>, %arg5: memref<128x128xbf16, #tpu.memory_space<vmem>>, %arg6: memref<128x128xf32, #tpu.memory_space<vmem>>) attributes {dimension_semantics = [#tpu.dimension_semantics<parallel>], iteration_bounds = array<i64: 1>, scalar_prefetch = 0 : i64, scratch_operands = 2 : i64, tpu.core_type = #tpu.core_type<tc>, window_params = [{transform_indices = @transform_0, window_bounds = array<i64: 11>}, {}, {transform_indices = @transform_2, window_bounds = array<i64: 128, 128>}, {transform_indices = @transform_3, window_bounds = array<i64: 128, 128>}]} {
    "tpu.region"() ({
      %97 = tpu.sem_alloc : memref<!tpu.dma_semaphore, #tpu.memory_space<semaphore_mem>>
      tpu.enqueue_dma source(%arg2 : memref<128x128xbf16, #tpu.memory_space<any>>) target(%arg5 : memref<128x128xbf16, #tpu.memory_space<vmem>>) target_semaphore(%97 : memref<!tpu.dma_semaphore, #tpu.memory_space<semaphore_mem>>)
      tpu.wait_dma2 semaphore(%97 : memref<!tpu.dma_semaphore, #tpu.memory_space<semaphore_mem>>) src(%arg2 : memref<128x128xbf16, #tpu.memory_space<any>>) dst(%arg5 : memref<128x128xbf16, #tpu.memory_space<vmem>>)
      tpu.yield
    }) : () -> ()
    %c0 = arith.constant 0 : index
    %c0_0 = arith.constant 0 : index
    %0 = vector.load %arg5[%c0, %c0_0] : memref<128x128xbf16, #tpu.memory_space<vmem>>, vector<128x128xbf16>
    %c0_1 = arith.constant 0 : index
    %c0_2 = arith.constant 0 : index
    %1 = vector.load %arg3[%c0_1, %c0_2] : memref<128x128xf32, #tpu.memory_space<vmem>>, vector<128x128xf32>
    %2 = arith.truncf %1 : vector<128x128xf32> to vector<128x128xbf16>
    %cst = arith.constant dense<0.000000e+00> : vector<128x128xf32>
    %3 = tpu.matmul %0, %2, %cst {dimension_numbers = #tpu.dot_dimension_numbers<[1], [0], [0], [1], [0, 0, 1, 1], [], []>} : vector<128x128xbf16>, vector<128x128xbf16>, vector<128x128xf32> -> vector<128x128xf32>
    %cst_3 = arith.constant 5.000000e-01 : f32
    %4 = vector.broadcast %cst_3 : f32 to vector<128x128xf32>
    %5 = arith.mulf %4, %3 : vector<128x128xf32>
    %c0_4 = arith.constant 0 : index
    %6 = memref.load %arg1[%c0_4] : memref<11xf32, #tpu.memory_space<smem>>
    %7 = vector.broadcast %6 : f32 to vector<128x128xf32>
    %8 = arith.mulf %7, %1 : vector<128x128xf32>
    %c1 = arith.constant 1 : index
    %9 = memref.load %arg1[%c1] : memref<11xf32, #tpu.memory_space<smem>>
    %10 = vector.broadcast %9 : f32 to vector<128x128xf32>
    %11 = arith.mulf %10, %5 : vector<128x128xf32>
    %12 = arith.addf %8, %11 : vector<128x128xf32>
    %c0_5 = arith.constant 0 : index
    %c0_6 = arith.constant 0 : index
    %13 = vector.load %arg6[%c0_5, %c0_6] : memref<128x128xf32, #tpu.memory_space<vmem>>, vector<128x128xf32>
    tpu.vector_store %arg6[%c0_5, %c0_6], %12 {strides = array<i32>} : memref<128x128xf32, #tpu.memory_space<vmem>>, vector<128x128xf32>,
    %14 = arith.truncf %5 : vector<128x128xf32> to vector<128x128xbf16>
    %cst_7 = arith.constant dense<0.000000e+00> : vector<128x128xf32>
    %15 = tpu.matmul %0, %14, %cst_7 {dimension_numbers = #tpu.dot_dimension_numbers<[1], [0], [0], [1], [0, 0, 1, 1], [], []>} : vector<128x128xbf16>, vector<128x128xbf16>, vector<128x128xf32> -> vector<128x128xf32>
    %16 = arith.subf %15, %1 : vector<128x128xf32>
    %c0_8 = arith.constant 0 : index
    %c0_9 = arith.constant 0 : index
    %17 = vector.load %arg6[%c0_8, %c0_9] : memref<128x128xf32, #tpu.memory_space<vmem>>, vector<128x128xf32>
    %c2 = arith.constant 2 : index
    %18 = memref.load %arg1[%c2] : memref<11xf32, #tpu.memory_space<smem>>
    %19 = vector.broadcast %18 : f32 to vector<128x128xf32>
    %20 = arith.mulf %19, %16 : vector<128x128xf32>
    %21 = arith.addf %17, %20 : vector<128x128xf32>
    %c0_10 = arith.constant 0 : index
    %c0_11 = arith.constant 0 : index
    %22 = vector.load %arg6[%c0_10, %c0_11] : memref<128x128xf32, #tpu.memory_space<vmem>>, vector<128x128xf32>
    tpu.vector_store %arg6[%c0_10, %c0_11], %21 {strides = array<i32>} : memref<128x128xf32, #tpu.memory_space<vmem>>, vector<128x128xf32>,
    %23 = arith.truncf %16 : vector<128x128xf32> to vector<128x128xbf16>
    %cst_12 = arith.constant dense<0.000000e+00> : vector<128x128xf32>
    %24 = tpu.matmul %0, %23, %cst_12 {dimension_numbers = #tpu.dot_dimension_numbers<[1], [0], [0], [1], [0, 0, 1, 1], [], []>} : vector<128x128xbf16>, vector<128x128xbf16>, vector<128x128xf32> -> vector<128x128xf32>
    %25 = arith.subf %24, %5 : vector<128x128xf32>
    %c0_13 = arith.constant 0 : index
    %c0_14 = arith.constant 0 : index
    %26 = vector.load %arg6[%c0_13, %c0_14] : memref<128x128xf32, #tpu.memory_space<vmem>>, vector<128x128xf32>
    %c3 = arith.constant 3 : index
    %27 = memref.load %arg1[%c3] : memref<11xf32, #tpu.memory_space<smem>>
    %28 = vector.broadcast %27 : f32 to vector<128x128xf32>
    %29 = arith.mulf %28, %25 : vector<128x128xf32>
    %30 = arith.addf %26, %29 : vector<128x128xf32>
    %c0_15 = arith.constant 0 : index
    %c0_16 = arith.constant 0 : index
    %31 = vector.load %arg6[%c0_15, %c0_16] : memref<128x128xf32, #tpu.memory_space<vmem>>, vector<128x128xf32>
    tpu.vector_store %arg6[%c0_15, %c0_16], %30 {strides = array<i32>} : memref<128x128xf32, #tpu.memory_space<vmem>>, vector<128x128xf32>,
    %32 = arith.truncf %25 : vector<128x128xf32> to vector<128x128xbf16>
    %cst_17 = arith.constant dense<0.000000e+00> : vector<128x128xf32>
    %33 = tpu.matmul %0, %32, %cst_17 {dimension_numbers = #tpu.dot_dimension_numbers<[1], [0], [0], [1], [0, 0, 1, 1], [], []>} : vector<128x128xbf16>, vector<128x128xbf16>, vector<128x128xf32> -> vector<128x128xf32>
    %34 = arith.subf %33, %16 : vector<128x128xf32>
    %c0_18 = arith.constant 0 : index
    %c0_19 = arith.constant 0 : index
    %35 = vector.load %arg6[%c0_18, %c0_19] : memref<128x128xf32, #tpu.memory_space<vmem>>, vector<128x128xf32>
    %c4 = arith.constant 4 : index
    %36 = memref.load %arg1[%c4] : memref<11xf32, #tpu.memory_space<smem>>
    %37 = vector.broadcast %36 : f32 to vector<128x128xf32>
    %38 = arith.mulf %37, %34 : vector<128x128xf32>
    %39 = arith.addf %35, %38 : vector<128x128xf32>
    %c0_20 = arith.constant 0 : index
    %c0_21 = arith.constant 0 : index
    %40 = vector.load %arg6[%c0_20, %c0_21] : memref<128x128xf32, #tpu.memory_space<vmem>>, vector<128x128xf32>
    tpu.vector_store %arg6[%c0_20, %c0_21], %39 {strides = array<i32>} : memref<128x128xf32, #tpu.memory_space<vmem>>, vector<128x128xf32>,
    %41 = arith.truncf %34 : vector<128x128xf32> to vector<128x128xbf16>
    %cst_22 = arith.constant dense<0.000000e+00> : vector<128x128xf32>
    %42 = tpu.matmul %0, %41, %cst_22 {dimension_numbers = #tpu.dot_dimension_numbers<[1], [0], [0], [1], [0, 0, 1, 1], [], []>} : vector<128x128xbf16>, vector<128x128xbf16>, vector<128x128xf32> -> vector<128x128xf32>
    %43 = arith.subf %42, %25 : vector<128x128xf32>
    %c0_23 = arith.constant 0 : index
    %c0_24 = arith.constant 0 : index
    %44 = vector.load %arg6[%c0_23, %c0_24] : memref<128x128xf32, #tpu.memory_space<vmem>>, vector<128x128xf32>
    %c5 = arith.constant 5 : index
    %45 = memref.load %arg1[%c5] : memref<11xf32, #tpu.memory_space<smem>>
    %46 = vector.broadcast %45 : f32 to vector<128x128xf32>
    %47 = arith.mulf %46, %43 : vector<128x128xf32>
    %48 = arith.addf %44, %47 : vector<128x128xf32>
    %c0_25 = arith.constant 0 : index
    %c0_26 = arith.constant 0 : index
    %49 = vector.load %arg6[%c0_25, %c0_26] : memref<128x128xf32, #tpu.memory_space<vmem>>, vector<128x128xf32>
    tpu.vector_store %arg6[%c0_25, %c0_26], %48 {strides = array<i32>} : memref<128x128xf32, #tpu.memory_space<vmem>>, vector<128x128xf32>,
    %50 = arith.truncf %43 : vector<128x128xf32> to vector<128x128xbf16>
    %cst_27 = arith.constant dense<0.000000e+00> : vector<128x128xf32>
    %51 = tpu.matmul %0, %50, %cst_27 {dimension_numbers = #tpu.dot_dimension_numbers<[1], [0], [0], [1], [0, 0, 1, 1], [], []>} : vector<128x128xbf16>, vector<128x128xbf16>, vector<128x128xf32> -> vector<128x128xf32>
    %52 = arith.subf %51, %34 : vector<128x128xf32>
    %c0_28 = arith.constant 0 : index
    %c0_29 = arith.constant 0 : index
    %53 = vector.load %arg6[%c0_28, %c0_29] : memref<128x128xf32, #tpu.memory_space<vmem>>, vector<128x128xf32>
    %c6 = arith.constant 6 : index
    %54 = memref.load %arg1[%c6] : memref<11xf32, #tpu.memory_space<smem>>
    %55 = vector.broadcast %54 : f32 to vector<128x128xf32>
    %56 = arith.mulf %55, %52 : vector<128x128xf32>
    %57 = arith.addf %53, %56 : vector<128x128xf32>
    %c0_30 = arith.constant 0 : index
    %c0_31 = arith.constant 0 : index
    %58 = vector.load %arg6[%c0_30, %c0_31] : memref<128x128xf32, #tpu.memory_space<vmem>>, vector<128x128xf32>
    tpu.vector_store %arg6[%c0_30, %c0_31], %57 {strides = array<i32>} : memref<128x128xf32, #tpu.memory_space<vmem>>, vector<128x128xf32>,
    %59 = arith.truncf %52 : vector<128x128xf32> to vector<128x128xbf16>
    %cst_32 = arith.constant dense<0.000000e+00> : vector<128x128xf32>
    %60 = tpu.matmul %0, %59, %cst_32 {dimension_numbers = #tpu.dot_dimension_numbers<[1], [0], [0], [1], [0, 0, 1, 1], [], []>} : vector<128x128xbf16>, vector<128x128xbf16>, vector<128x128xf32> -> vector<128x128xf32>
    %61 = arith.subf %60, %43 : vector<128x128xf32>
    %c0_33 = arith.constant 0 : index
    %c0_34 = arith.constant 0 : index
    %62 = vector.load %arg6[%c0_33, %c0_34] : memref<128x128xf32, #tpu.memory_space<vmem>>, vector<128x128xf32>
    %c7 = arith.constant 7 : index
    %63 = memref.load %arg1[%c7] : memref<11xf32, #tpu.memory_space<smem>>
    %64 = vector.broadcast %63 : f32 to vector<128x128xf32>
    %65 = arith.mulf %64, %61 : vector<128x128xf32>
    %66 = arith.addf %62, %65 : vector<128x128xf32>
    %c0_35 = arith.constant 0 : index
    %c0_36 = arith.constant 0 : index
    %67 = vector.load %arg6[%c0_35, %c0_36] : memref<128x128xf32, #tpu.memory_space<vmem>>, vector<128x128xf32>
    tpu.vector_store %arg6[%c0_35, %c0_36], %66 {strides = array<i32>} : memref<128x128xf32, #tpu.memory_space<vmem>>, vector<128x128xf32>,
    %68 = arith.truncf %61 : vector<128x128xf32> to vector<128x128xbf16>
    %cst_37 = arith.constant dense<0.000000e+00> : vector<128x128xf32>
    %69 = tpu.matmul %0, %68, %cst_37 {dimension_numbers = #tpu.dot_dimension_numbers<[1], [0], [0], [1], [0, 0, 1, 1], [], []>} : vector<128x128xbf16>, vector<128x128xbf16>, vector<128x128xf32> -> vector<128x128xf32>
    %70 = arith.subf %69, %52 : vector<128x128xf32>
    %c0_38 = arith.constant 0 : index
    %c0_39 = arith.constant 0 : index
    %71 = vector.load %arg6[%c0_38, %c0_39] : memref<128x128xf32, #tpu.memory_space<vmem>>, vector<128x128xf32>
    %c8 = arith.constant 8 : index
    %72 = memref.load %arg1[%c8] : memref<11xf32, #tpu.memory_space<smem>>
    %73 = vector.broadcast %72 : f32 to vector<128x128xf32>
    %74 = arith.mulf %73, %70 : vector<128x128xf32>
    %75 = arith.addf %71, %74 : vector<128x128xf32>
    %c0_40 = arith.constant 0 : index
    %c0_41 = arith.constant 0 : index
    %76 = vector.load %arg6[%c0_40, %c0_41] : memref<128x128xf32, #tpu.memory_space<vmem>>, vector<128x128xf32>
    tpu.vector_store %arg6[%c0_40, %c0_41], %75 {strides = array<i32>} : memref<128x128xf32, #tpu.memory_space<vmem>>, vector<128x128xf32>,
    %77 = arith.truncf %70 : vector<128x128xf32> to vector<128x128xbf16>
    %cst_42 = arith.constant dense<0.000000e+00> : vector<128x128xf32>
    %78 = tpu.matmul %0, %77, %cst_42 {dimension_numbers = #tpu.dot_dimension_numbers<[1], [0], [0], [1], [0, 0, 1, 1], [], []>} : vector<128x128xbf16>, vector<128x128xbf16>, vector<128x128xf32> -> vector<128x128xf32>
    %79 = arith.subf %78, %61 : vector<128x128xf32>
    %c0_43 = arith.constant 0 : index
    %c0_44 = arith.constant 0 : index
    %80 = vector.load %arg6[%c0_43, %c0_44] : memref<128x128xf32, #tpu.memory_space<vmem>>, vector<128x128xf32>
    %c9 = arith.constant 9 : index
    %81 = memref.load %arg1[%c9] : memref<11xf32, #tpu.memory_space<smem>>
    %82 = vector.broadcast %81 : f32 to vector<128x128xf32>
    %83 = arith.mulf %82, %79 : vector<128x128xf32>
    %84 = arith.addf %80, %83 : vector<128x128xf32>
    %c0_45 = arith.constant 0 : index
    %c0_46 = arith.constant 0 : index
    %85 = vector.load %arg6[%c0_45, %c0_46] : memref<128x128xf32, #tpu.memory_space<vmem>>, vector<128x128xf32>
    tpu.vector_store %arg6[%c0_45, %c0_46], %84 {strides = array<i32>} : memref<128x128xf32, #tpu.memory_space<vmem>>, vector<128x128xf32>,
    %86 = arith.truncf %79 : vector<128x128xf32> to vector<128x128xbf16>
    %cst_47 = arith.constant dense<0.000000e+00> : vector<128x128xf32>
    %87 = tpu.matmul %0, %86, %cst_47 {dimension_numbers = #tpu.dot_dimension_numbers<[1], [0], [0], [1], [0, 0, 1, 1], [], []>} : vector<128x128xbf16>, vector<128x128xbf16>, vector<128x128xf32> -> vector<128x128xf32>
    %88 = arith.subf %87, %70 : vector<128x128xf32>
    %c0_48 = arith.constant 0 : index
    %c0_49 = arith.constant 0 : index
    %89 = vector.load %arg6[%c0_48, %c0_49] : memref<128x128xf32, #tpu.memory_space<vmem>>, vector<128x128xf32>
    %c10 = arith.constant 10 : index
    %90 = memref.load %arg1[%c10] : memref<11xf32, #tpu.memory_space<smem>>
    %91 = vector.broadcast %90 : f32 to vector<128x128xf32>
    %92 = arith.mulf %91, %88 : vector<128x128xf32>
    %93 = arith.addf %89, %92 : vector<128x128xf32>
    %c0_50 = arith.constant 0 : index
    %c0_51 = arith.constant 0 : index
    %94 = vector.load %arg6[%c0_50, %c0_51] : memref<128x128xf32, #tpu.memory_space<vmem>>, vector<128x128xf32>
    tpu.vector_store %arg6[%c0_50, %c0_51], %93 {strides = array<i32>} : memref<128x128xf32, #tpu.memory_space<vmem>>, vector<128x128xf32>,
    %c0_52 = arith.constant 0 : index
    %c0_53 = arith.constant 0 : index
    %95 = vector.load %arg6[%c0_52, %c0_53] : memref<128x128xf32, #tpu.memory_space<vmem>>, vector<128x128xf32>
    %c0_54 = arith.constant 0 : index
    %c0_55 = arith.constant 0 : index
    %96 = vector.load %arg4[%c0_54, %c0_55] : memref<128x128xf32, #tpu.memory_space<vmem>>, vector<128x128xf32>
    tpu.vector_store %arg4[%c0_54, %c0_55], %95 {strides = array<i32>} : memref<128x128xf32, #tpu.memory_space<vmem>>, vector<128x128xf32>,
    return
  }
  func.func @transform_0(%arg0: i32) -> i32 {
    %c0_i32 = arith.constant 0 : i32
    %c0_i32_0 = arith.constant 0 : i32
    return %c0_i32 : i32
  }
  func.func @transform_2(%arg0: i32) -> (i32, i32) {
    %c0_i32 = arith.constant 0 : i32
    %c0_i32_0 = arith.constant 0 : i32
    return %c0_i32, %arg0 : i32, i32
  }
  func.func @transform_3(%arg0: i32) -> (i32, i32) {
    %c0_i32 = arith.constant 0 : i32
    %c0_i32_0 = arith.constant 0 : i32
    return %c0_i32, %arg0 : i32, i32
  }
}

</mosaic_0001>

<bundles_post_ra>
// kernel: tpu_custom_call.1
= control target key start
LH: loop header
LB: loop body
LE: loop exit
PB: predicated region body
PF: predicated region fallthrough
CT: control target
= control target key end

     0   :  { %8 = vsyncpa [#allocation7], 0  ;;  %s2946_s0 = inlined_call_operand.hbm [shape: f32[11], index: 0, kind: input, shape index: {}]   ;;  %s2947_s1 = inlined_call_operand.hbm [shape: bf16[128,128], index: 1, kind: input, shape index: {}]   ;;  %s2948_s2 = inlined_call_operand.hbm [shape: f32[128,128], index: 2, kind: input, shape index: {}]   ;;  %s2949_s3 = inlined_call_operand.hbm [shape: f32[128,128], index: 3, kind: output, shape index: {}]  }
   0x1   :  { %9 = vsyncpa [#allocation5], 0 }
   0x2   :  { %10 = vsyncpa [#allocation6], 0  ;;  %s16_s14 = sshll.u32 %s2946_s0, 4  ;;  %s24_s17 = sshll.u32 %s2948_s2, 4  ;;  %s17_s14 = int_to_ptr.hbm [resolvable:$true] %s16_s14  ;;  %s25_s17 = int_to_ptr.hbm [resolvable:$true] %s24_s17 }
   0x3   :  { %s1763_s18 = smov [#allocation4]   ;;  %s1764_s19 = smov [#allocation8]  }
   0x4   :  { %19 = dma.hbm_to_smem %s17_s14, 16, %s1763_s18, [#allocation7]  }
   0x5   :  { %s26_s20 = sshll.u32 %s1764_s19, 4  ;;  %s1765_s21 = smov 128   ;;  %s27_s20 = int_to_ptr.vmem [resolvable:$true] %s26_s20 }
   0x6   :  { %s1766_s22 = smov 8  }
   0x7   :  { %32 = dma.hbm_to_vmem [thread:$0]  %s25_s17, 2048, %s27_s20, [#allocation5], %s1765_s21, %s1765_s21, %s1766_s22  }
   0x8   :  { %1755 = dma.done.wait [#allocation7], 16  }
   0x9   :  { %1756 = vsyncadd [#allocation7], 4294967280 }
   0xa   :  { %1757 = dma.done.wait [#allocation5], 2048  }
   0xb   :  { %1758 = vsyncadd [#allocation5], 4294965248 }
   0xc   :  { %41 = sfence }
   0xd   :  { %s49_s2 = sshll.u32 %s2947_s1, 4  ;;  %s1767_s24 = smov [#allocation2]   ;;  %s50_s2 = int_to_ptr.hbm [resolvable:$true] %s49_s2 }
   0xe   :  { %s51_s25 = sshll.u32 %s1767_s24, 4  ;;  %s52_s25 = int_to_ptr.vmem [resolvable:$true] %s51_s25 }
   0xf   :  { %54 = dma.hbm_to_vmem [thread:$0]  %s50_s2, 1024, %s52_s25, [#allocation10] }
  0x10   :  { %1759 = dma.done.wait [#allocation10], 1024 }
  0x11   :  { %1760 = vsyncadd [#allocation10], 4294966272  ;;  %v1801_v0 = vld [vmem:[#allocation8 + $0x70] sm:$0xff]  ;;  %v1803_v1 = vld [vmem:[#allocation8 + $0x78] sm:$0xff]  ;;  %s212_s1 = sld [smem:[#allocation4]]  ;;  %s1768_s9 = smov [#allocation9]  }
  0x12   :  { %v1805_v2 = vld [vmem:[#allocation8 + $0x60] sm:$0xff]  ;;  %v98_v3 = vpack.c.bf16 %v1803_v1, %v1801_v0  ;;  %v1809_v4 = vld [vmem:[#allocation8 + $0x68] sm:$0xff]  ;;  %v1813_v6 = vld [vmem:[#allocation8 + $0x50] sm:$0xff]  ;;  %s1615_s26 = sld [smem:[#allocation4 + $0x1]]  ;;  %s1567_s10 = sshll.u32 %s1768_s9, 4  ;;  %s1568_s10 = int_to_ptr.vmem [resolvable:$true] %s1567_s10 }
  0x13   :  { %v97_v5 = vpack.c.bf16 %v1809_v4, %v1805_v2  ;;  %v1815_v7 = vld [vmem:[#allocation8 + $0x58] sm:$0xff]  ;;  %v1819_v9 = vld [vmem:[#allocation8 + $0x40] sm:$0xff]  ;;  %v1821_v10 = vld [vmem:[#allocation8 + $0x48] sm:$0xff]  ;;  %s1616_s27 = sld [smem:[#allocation4 + $0x2]]  ;;  %s1569_s13 = sshll.u32 %s2949_s3, 4  ;;  %s1570_s13 = int_to_ptr.hbm [resolvable:$true] %s1569_s13 }
  0x14   :  { %1633 = vmatpush.bf16.msra.mxu2 %v98_v3  ;;  %147 = vmatpush.bf16.msra.mxu0 %v98_v3  ;;  %v96_v8 = vpack.c.bf16 %v1815_v7, %v1813_v6  ;;  %v95_v11 = vpack.c.bf16 %v1821_v10, %v1819_v9  ;;  %v1825_v12 = vld [vmem:[#allocation8 + $0x30] sm:$0xff]  ;;  %v1827_v13 = vld [vmem:[#allocation8 + $0x38] sm:$0xff]  ;;  %v1831_v15 = vld [vmem:[#allocation8 + $0x20] sm:$0xff]  ;;  %s1617_s28 = sld [smem:[#allocation4 + $0x3]] }
  0x15   :  { %v94_v14 = vpack.c.bf16 %v1827_v13, %v1825_v12  ;;  %v1833_v16 = vld [vmem:[#allocation8 + $0x28] sm:$0xff]  ;;  %v1837_v18 = vld [vmem:[#allocation8 + $0x10] sm:$0xff]  ;;  %v1839_v19 = vld [vmem:[#allocation8 + $0x18] sm:$0xff]  ;;  %s1618_s29 = sld [smem:[#allocation4 + $0x4]] }
  0x16   :  { %v93_v17 = vpack.c.bf16 %v1833_v16, %v1831_v15  ;;  %v92_v20 = vpack.c.bf16 %v1839_v19, %v1837_v18  ;;  %v1843_v21 = vld [vmem:[#allocation8] sm:$0xff]  ;;  %v1845_v22 = vld [vmem:[#allocation8 + $0x8] sm:$0xff]  ;;  %v1861_v28 = vld [vmem:[#allocation2 + $0x30] sm:$0xff]  ;;  %s1619_s30 = sld [smem:[#allocation4 + $0x5]] }
  0x17   :  { %v91_v23 = vpack.c.bf16 %v1845_v22, %v1843_v21  ;;  %v1849_v24 = vld [vmem:[#allocation2 + $0x20] sm:$0xff]  ;;  %v1855_v26 = vld [vmem:[#allocation2 + $0x28] sm:$0xff]  ;;  %v1863_v29 = vld [vmem:[#allocation2 + $0x10] sm:$0xff]  ;;  %v1873_v32 = vstv %s212_s1  ;;  %s1620_s4 = sld [smem:[#allocation4 + $0x6]] }
  0x18   :  { %1634 = vmatpush.bf16.msra.mxu2 %v97_v5  ;;  %148 = vmatpush.bf16.msra.mxu0 %v97_v5  ;;  %v1851_v25 = vld [vmem:[#allocation2] sm:$0xff]  ;;  %v1857_v27 = vld [vmem:[#allocation2 + $0x8] sm:$0xff]  ;;  %v1867_v30 = vld [vmem:[#allocation2 + $0x38] sm:$0xff]  ;;  %3044 = vst [vmem:[#allocation19_spill] sm:$0xff] %v1873_v32  ;;  %v1877_v35 = vstv %s1615_s26  ;;  %v222_v36 = vmul.f32 %v1873_v32, %v1819_v9  ;;  %v223_v42 = vmul.f32 %v1873_v32, %v1821_v10  ;;  %s1621_s5 = sld [smem:[#allocation4 + $0x7]] }
  0x19   :  { %v1869_v31 = vld [vmem:[#allocation2 + $0x18] sm:$0xff]  ;;  %3045 = vst [vmem:[#allocation20_spill] sm:$0xff] %v1877_v35  ;;  %v224_v47 = vmul.f32 %v1873_v32, %v1813_v6  ;;  %v225_v53 = vmul.f32 %v1873_v32, %v1815_v7  ;;  %v226_v59 = vmul.f32 %v1873_v32, %v1805_v2  ;;  %v227_v5 = vmul.f32 %v1873_v32, %v1809_v4  ;;  %s1622_s6 = sld [smem:[#allocation4 + $0x8]] }
  0x1a   :  { %s1623_s7 = sld [smem:[#allocation4 + $0x9]] }
  0x1b   :  { %s1624_s8 = sld [smem:[#allocation4 + $0xa]] }
  0x1c   :  { %1635 = vmatpush.bf16.msra.mxu2 %v96_v8  ;;  %149 = vmatpush.bf16.msra.mxu0 %v96_v8 }
  0x20   :  { %1636 = vmatpush.bf16.msra.mxu2 %v95_v11  ;;  %150 = vmatpush.bf16.msra.mxu0 %v95_v11 }
  0x24   :  { %1637 = vmatpush.bf16.msra.mxu2 %v94_v14  ;;  %151 = vmatpush.bf16.msra.mxu0 %v94_v14 }
  0x28   :  { %1638 = vmatpush.bf16.msra.mxu2 %v93_v17  ;;  %152 = vmatpush.bf16.msra.mxu0 %v93_v17 }
  0x2c   :  { %1639 = vmatpush.bf16.msra.mxu2 %v92_v20  ;;  %153 = vmatpush.bf16.msra.mxu0 %v92_v20 }
  0x30   :  { %1640 = vmatpush.bf16.msra.mxu2 %v91_v23  ;;  %154 = vmatpush.bf16.msra.mxu0 %v91_v23  ;;  %v228_v23 = vmul.f32 %v1873_v32, %v1801_v0 }
  0x33   :  { %175 = vmatmul.bf16.vlgmr.msra.gmra.mxu2 %v1849_v24  ;;  %155 = vmatmul.bf16.vlgmr.msra.gmra.mxu0 %v1851_v25 }
  0x43   :  { %180 = vmatmul.bf16.gmra.mxu2 %v1855_v26  ;;  %160 = vmatmul.bf16.gmra.mxu0 %v1857_v27 }
  0x53   :  { %185 = vmatmul.bf16.gmra.mxu2 %v1861_v28  ;;  %165 = vmatmul.bf16.gmra.mxu0 %v1863_v29 }
  0x63   :  { %190 = vmatmul.bf16.gmra.mxu2 %v1867_v30  ;;  %170 = vmatmul.bf16.gmra.mxu0 %v1869_v31 }
  0xb0   :  { %v1875_v33 = vpop.f32.mrf.mxu0 }
  0xb6   :  { %v176_v34 = vpop.f32.mrf.mxu2 }
  0xb7   :  { %v1881_v37 = vmul.f32 0.5, %v176_v34 }
  0xb8   :  { %v1887_v41 = vpop.f32.mrf.mxu0 }
  0xb9   :  { %v240_v38 = vmul.f32 %v1877_v35, %v1881_v37 }
  0xbb   :  { %v1885_v39 = vadd.f32 %v240_v38, %v222_v36 }
  0xbe   :  { %v178_v40 = vpop.f32.mrf.mxu2 }
  0xbf   :  { %v1891_v43 = vmul.f32 0.5, %v178_v40 }
  0xc0   :  { %v161_v49 = vpop.f32.mrf.mxu0 }
  0xc1   :  { %v241_v44 = vmul.f32 %v1877_v35, %v1891_v43 }
  0xc3   :  { %v1895_v45 = vadd.f32 %v241_v44, %v223_v42  ;;  %v229_v42 = vmul.f32 %v1873_v32, %v1803_v1 }
  0xc6   :  { %v181_v46 = vpop.f32.mrf.mxu2 }
  0xc7   :  { %v1899_v48 = vmul.f32 0.5, %v181_v46 }
  0xc8   :  { %v163_v56 = vpop.f32.mrf.mxu0 }
  0xc9   :  { %v242_v50 = vmul.f32 %v1877_v35, %v1899_v48 }
  0xcb   :  { %v1903_v51 = vadd.f32 %v242_v50, %v224_v47 }
  0xce   :  { %v183_v52 = vpop.f32.mrf.mxu2 }
  0xcf   :  { %v1907_v54 = vmul.f32 0.5, %v183_v52 }
  0xd0   :  { %v166_v63 = vpop.f32.mrf.mxu0 }
  0xd1   :  { %v243_v55 = vmul.f32 %v1877_v35, %v1907_v54 }
  0xd3   :  { %v1911_v57 = vadd.f32 %v243_v55, %v225_v53  ;;  %v285_v55 = vpack.c.bf16 %v1907_v54, %v1899_v48 }
  0xd6   :  { %v186_v58 = vpop.f32.mrf.mxu2 }
  0xd7   :  { %v1915_v60 = vmul.f32 0.5, %v186_v58 }
  0xd8   :  { %v168_v17 = vpop.f32.mrf.mxu0 }
  0xd9   :  { %v244_v61 = vmul.f32 %v1877_v35, %v1915_v60 }
  0xdb   :  { %v1919_v62 = vadd.f32 %v244_v61, %v226_v59 }
  0xde   :  { %v188_v3 = vpop.f32.mrf.mxu2 }
  0xdf   :  { %v1923_v8 = vmul.f32 0.5, %v188_v3  ;;  %v284_v3 = vpack.c.bf16 %v1891_v43, %v1881_v37 }
  0xe0   :  { %v171_v46 = vpop.f32.mrf.mxu0 }
  0xe1   :  { %v245_v11 = vmul.f32 %v1877_v35, %v1923_v8  ;;  %v286_v53 = vpack.c.bf16 %v1923_v8, %v1915_v60  ;;  %v1951_v59 = vmul.f32 0.5, %v171_v46  ;;  %v1990_v46 = vstv %s1616_s27 }
  0xe2   :  { %3054 = vst [vmem:[#allocation29_spill] sm:$0xff] %v1990_v46 }
  0xe3   :  { %v1927_v14 = vadd.f32 %v245_v11, %v227_v5  ;;  %3046 = vst [vmem:[#allocation21_spill] sm:$0xff] %v1951_v59  ;;  %v1957_v5 = vmul.f32 0.5, %v166_v63  ;;  %v1959_v11 = vmul.f32 0.5, %v168_v17  ;;  %v1973_v63 = vmul.f32 0.5, %v1887_v41 }
  0xe5   :  { %3048 = vst [vmem:[#allocation23_spill] sm:$0xff] %v1957_v5 }
  0xe6   :  { %v191_v20 = vpop.f32.mrf.mxu2  ;;  %3049 = vst [vmem:[#allocation24_spill] sm:$0xff] %v1959_v11 }
  0xe7   :  { %v1931_v34 = vmul.f32 0.5, %v191_v20  ;;  %3053 = vst [vmem:[#allocation28_spill] sm:$0xff] %v1973_v63 }
  0xe8   :  { %v173_v58 = vpop.f32.mrf.mxu0 }
  0xe9   :  { %v246_v36 = vmul.f32 %v1877_v35, %v1931_v34  ;;  %v1953_v61 = vmul.f32 0.5, %v173_v58 }
  0xeb   :  { %v1935_v38 = vadd.f32 %v246_v36, %v228_v23  ;;  %3047 = vst [vmem:[#allocation22_spill] sm:$0xff] %v1953_v61  ;;  %v283_v20 = vpack.c.bf16 %v1953_v61, %v1951_v59  ;;  %v1963_v23 = vmul.f32 0.5, %v161_v49  ;;  %v1965_v36 = vmul.f32 0.5, %v163_v56 }
  0xed   :  { %3050 = vst [vmem:[#allocation25_spill] sm:$0xff] %v1963_v23  ;;  %v281_v17 = vpack.c.bf16 %v1965_v36, %v1963_v23 }
  0xee   :  { %v193_v40 = vpop.f32.mrf.mxu2  ;;  %3051 = vst [vmem:[#allocation26_spill] sm:$0xff] %v1965_v36 }
  0xef   :  { %v1939_v44 = vmul.f32 0.5, %v193_v40  ;;  %v282_v40 = vpack.c.bf16 %v1959_v11, %v1957_v5 }
  0xf1   :  { %v247_v47 = vmul.f32 %v1877_v35, %v1939_v44  ;;  %v287_v50 = vpack.c.bf16 %v1939_v44, %v1931_v34 }
  0xf3   :  { %v1945_v52 = vadd.f32 %v247_v47, %v229_v42  ;;  %288 = vmatpush.bf16.msra.mxu1 %v287_v50  ;;  %1641 = vmatpush.bf16.msra.mxu3 %v287_v50  ;;  %v1970_v42 = vmul.f32 0.5, %v1875_v33 }
  0xf5   :  { %3052 = vst [vmem:[#allocation27_spill] sm:$0xff] %v1970_v42  ;;  %v280_v49 = vpack.c.bf16 %v1973_v63, %v1970_v42 }
  0xf7   :  { %289 = vmatpush.bf16.msra.mxu1 %v286_v53  ;;  %1642 = vmatpush.bf16.msra.mxu3 %v286_v53 }
  0xfb   :  { %290 = vmatpush.bf16.msra.mxu1 %v285_v55  ;;  %1643 = vmatpush.bf16.msra.mxu3 %v285_v55 }
  0xff   :  { %291 = vmatpush.bf16.msra.mxu1 %v284_v3  ;;  %1644 = vmatpush.bf16.msra.mxu3 %v284_v3 }
 0x103   :  { %292 = vmatpush.bf16.msra.mxu1 %v283_v20  ;;  %1645 = vmatpush.bf16.msra.mxu3 %v283_v20 }
 0x107   :  { %293 = vmatpush.bf16.msra.mxu1 %v282_v40  ;;  %1646 = vmatpush.bf16.msra.mxu3 %v282_v40 }
 0x10b   :  { %294 = vmatpush.bf16.msra.mxu1 %v281_v17  ;;  %1647 = vmatpush.bf16.msra.mxu3 %v281_v17 }
 0x10f   :  { %295 = vmatpush.bf16.msra.mxu1 %v280_v49  ;;  %1648 = vmatpush.bf16.msra.mxu3 %v280_v49 }
 0x112   :  { %296 = vmatmul.bf16.vlgmr.msra.gmra.mxu1 %v1851_v25  ;;  %316 = vmatmul.bf16.vlgmr.msra.gmra.mxu3 %v1849_v24 }
 0x122   :  { %301 = vmatmul.bf16.gmra.mxu1 %v1857_v27  ;;  %321 = vmatmul.bf16.gmra.mxu3 %v1855_v26 }
 0x132   :  { %306 = vmatmul.bf16.gmra.mxu1 %v1863_v29  ;;  %326 = vmatmul.bf16.gmra.mxu3 %v1861_v28 }
 0x142   :  { %311 = vmatmul.bf16.gmra.mxu1 %v1869_v31  ;;  %331 = vmatmul.bf16.gmra.mxu3 %v1867_v30 }
 0x18f   :  { %v297_v33 = vpop.f32.mrf.mxu1 }
 0x195   :  { %v317_v41 = vpop.f32.mrf.mxu3 }
 0x196   :  { %v1988_v56 = vsub.f32 %v317_v41, %v1819_v9 }
 0x197   :  { %v299_v58 = vpop.f32.mrf.mxu1 }
 0x198   :  { %v379_v47 = vmul.f32 %v1990_v46, %v1988_v56 }
 0x19a   :  { %v1995_v50 = vadd.f32 %v379_v47, %v1885_v39 }
 0x19c   :  { %3055 = vst [vmem:[#allocation30_spill] sm:$0xff] %v1995_v50 }
 0x19d   :  { %v319_v53 = vpop.f32.mrf.mxu3 }
 0x19e   :  { %v1998_v55 = vsub.f32 %v319_v53, %v1821_v10 }
 0x19f   :  { %v302_v39 = vpop.f32.mrf.mxu1 }
 0x1a0   :  { %v380_v3 = vmul.f32 %v1990_v46, %v1998_v55 }
 0x1a2   :  { %v2003_v20 = vadd.f32 %v380_v3, %v1895_v45 }
 0x1a4   :  { %3056 = vst [vmem:[#allocation31_spill] sm:$0xff] %v2003_v20 }
 0x1a5   :  { %v322_v9 = vpop.f32.mrf.mxu3 }
 0x1a6   :  { %v2006_v40 = vsub.f32 %v322_v9, %v1813_v6 }
 0x1a7   :  { %v304_v53 = vpop.f32.mrf.mxu1 }
 0x1a8   :  { %v381_v17 = vmul.f32 %v1990_v46, %v2006_v40 }
 0x1aa   :  { %v2011_v49 = vadd.f32 %v381_v17, %v1903_v51 }
 0x1ac   :  { %3057 = vst [vmem:[#allocation32_spill] sm:$0xff] %v2011_v49 }
 0x1ad   :  { %v324_v10 = vpop.f32.mrf.mxu3 }
 0x1ae   :  { %v2014_v41 = vsub.f32 %v324_v10, %v1815_v7 }
 0x1af   :  { %v307_v17 = vpop.f32.mrf.mxu1 }
 0x1b0   :  { %v382_v47 = vmul.f32 %v1990_v46, %v2014_v41 }
 0x1b2   :  { %v2019_v45 = vadd.f32 %v382_v47, %v1911_v57 }
 0x1b4   :  { %3058 = vst [vmem:[#allocation33_spill] sm:$0xff] %v2019_v45 }
 0x1b5   :  { %v327_v6 = vpop.f32.mrf.mxu3 }
 0x1b6   :  { %v2022_v3 = vsub.f32 %v327_v6, %v1805_v2 }
 0x1b7   :  { %v309_v6 = vpop.f32.mrf.mxu1 }
 0x1b8   :  { %v383_v9 = vmul.f32 %v1990_v46, %v2022_v3 }
 0x1ba   :  { %v2027_v51 = vadd.f32 %v383_v9, %v1919_v62 }
 0x1bc   :  { %3059 = vst [vmem:[#allocation34_spill] sm:$0xff] %v2027_v51 }
 0x1bd   :  { %v329_v7 = vpop.f32.mrf.mxu3 }
 0x1be   :  { %v2030_v10 = vsub.f32 %v329_v7, %v1809_v4 }
 0x1c0   :  { %v384_v57 = vmul.f32 %v1990_v46, %v2030_v10 }
 0x1c2   :  { %v2035_v47 = vadd.f32 %v384_v57, %v1927_v14  ;;  %v312_v57 = vpop.f32.mrf.mxu1 }
 0x1c4   :  { %3060 = vst [vmem:[#allocation35_spill] sm:$0xff] %v2035_v47 }
 0x1c5   :  { %v332_v35 = vpop.f32.mrf.mxu3 }
 0x1c6   :  { %v2038_v2 = vsub.f32 %v332_v35, %v1801_v0  ;;  %v425_v35 = vpack.c.bf16 %v2030_v10, %v2022_v3 }
 0x1c8   :  { %v385_v62 = vmul.f32 %v1990_v46, %v2038_v2 }
 0x1ca   :  { %v2043_v9 = vadd.f32 %v385_v62, %v1935_v38  ;;  %v424_v38 = vpack.c.bf16 %v2014_v41, %v2006_v40  ;;  %v2062_v62 = vsub.f32 %v312_v57, %v1825_v12  ;;  %v2078_v12 = vsub.f32 %v302_v39, %v1837_v18 }
 0x1cc   :  { %3061 = vst [vmem:[#allocation36_spill] sm:$0xff] %v2043_v9 }
 0x1cd   :  { %v334_v32 = vpop.f32.mrf.mxu3  ;;  %3063 = vst [vmem:[#allocation38_spill] sm:$0xff] %v2062_v62 }
 0x1ce   :  { %v2046_v4 = vsub.f32 %v334_v32, %v1803_v1  ;;  %v314_v1 = vpop.f32.mrf.mxu1  ;;  %v423_v32 = vpack.c.bf16 %v1998_v55, %v1988_v56  ;;  %3067 = vst [vmem:[#allocation42_spill] sm:$0xff] %v2078_v12 }
 0x1d0   :  { %v386_v7 = vmul.f32 %v1990_v46, %v2046_v4  ;;  %v426_v14 = vpack.c.bf16 %v2046_v4, %v2038_v2  ;;  %v2065_v46 = vsub.f32 %v314_v1, %v1827_v13  ;;  %v2081_v13 = vsub.f32 %v304_v53, %v1839_v19 }
 0x1d2   :  { %v2053_v0 = vadd.f32 %v386_v7, %v1945_v52  ;;  %427 = vmatpush.bf16.msrb.mxu2 %v426_v14  ;;  %3064 = vst [vmem:[#allocation39_spill] sm:$0xff] %v2065_v46  ;;  %v422_v52 = vpack.c.bf16 %v2065_v46, %v2062_v62  ;;  %v2070_v7 = vsub.f32 %v307_v17, %v1831_v15 }
 0x1d3   :  { %v2073_v14 = vsub.f32 %v309_v6, %v1833_v16  ;;  %3068 = vst [vmem:[#allocation43_spill] sm:$0xff] %v2081_v13  ;;  %v420_v57 = vpack.c.bf16 %v2081_v13, %v2078_v12  ;;  %v2086_v15 = vsub.f32 %v297_v33, %v1843_v21  ;;  %v2089_v16 = vsub.f32 %v299_v58, %v1845_v22 }
 0x1d4   :  { %3062 = vst [vmem:[#allocation37_spill] sm:$0xff] %v2053_v0 }
 0x1d5   :  { %3065 = vst [vmem:[#allocation40_spill] sm:$0xff] %v2070_v7  ;;  %v419_v17 = vpack.c.bf16 %v2089_v16, %v2086_v15 }
 0x1d6   :  { %428 = vmatpush.bf16.msrb.mxu2 %v425_v35  ;;  %3066 = vst [vmem:[#allocation41_spill] sm:$0xff] %v2073_v14  ;;  %v421_v35 = vpack.c.bf16 %v2073_v14, %v2070_v7 }
 0x1d7   :  { %3069 = vst [vmem:[#allocation44_spill] sm:$0xff] %v2086_v15 }
 0x1d8   :  { %3070 = vst [vmem:[#allocation45_spill] sm:$0xff] %v2089_v16 }
 0x1da   :  { %429 = vmatpush.bf16.msrb.mxu2 %v424_v38 }
 0x1de   :  { %430 = vmatpush.bf16.msrb.mxu2 %v423_v32 }
 0x1e2   :  { %431 = vmatpush.bf16.msrb.mxu2 %v422_v52 }
 0x1e6   :  { %432 = vmatpush.bf16.msrb.mxu2 %v421_v35 }
 0x1ea   :  { %433 = vmatpush.bf16.msrb.mxu2 %v420_v57 }
 0x1ee   :  { %434 = vmatpush.bf16.msrb.mxu2 %v419_v17 }
 0x1f1   :  { %435 = vmatmul.bf16.vlgmr.msrb.gmra.mxu2 %v1851_v25 }
 0x201   :  { %440 = vmatmul.bf16.gmra.mxu2 %v1857_v27 }
 0x211   :  { %445 = vmatmul.bf16.gmra.mxu2 %v1863_v29 }
 0x221   :  { %450 = vmatmul.bf16.gmra.mxu2 %v1869_v31 }
 0x231   :  { %455 = vmatmul.bf16.gmra.mxu2 %v1849_v24 }
 0x241   :  { %460 = vmatmul.bf16.gmra.mxu2 %v1855_v26 }
 0x251   :  { %465 = vmatmul.bf16.gmra.mxu2 %v1861_v28 }
 0x261   :  { %470 = vmatmul.bf16.gmra.mxu2 %v1867_v30 }
 0x274   :  { %v436_v18 = vpop.f32.mrf.mxu2 }
 0x27c   :  { %v438_v19 = vpop.f32.mrf.mxu2 }
 0x284   :  { %v441_v21 = vpop.f32.mrf.mxu2 }
 0x28c   :  { %v443_v22 = vpop.f32.mrf.mxu2 }
 0x294   :  { %v446_v33 = vpop.f32.mrf.mxu2 }
 0x29c   :  { %v448_v58 = vpop.f32.mrf.mxu2 }
 0x2a4   :  { %v451_v39 = vpop.f32.mrf.mxu2 }
 0x2ac   :  { %v453_v53 = vpop.f32.mrf.mxu2 }
 0x2b4   :  { %v456_v6 = vpop.f32.mrf.mxu2 }
 0x2bc   :  { %v458_v38 = vpop.f32.mrf.mxu2 }
 0x2c4   :  { %v461_v1 = vpop.f32.mrf.mxu2 }
 0x2cc   :  { %v463_v32 = vpop.f32.mrf.mxu2 }
 0x2cd   :  { %v2116_v49 = vsub.f32 %v463_v32, %v1907_v54  ;;  %v2132_v54 = vsub.f32 %v453_v53, %v1953_v61  ;;  %v2148_v53 = vsub.f32 %v443_v22, %v1965_v36 }
 0x2cf   :  { %3075 = vst [vmem:[#allocation50_spill] sm:$0xff] %v2116_v49 }
 0x2d0   :  { %3078 = vst [vmem:[#allocation53_spill] sm:$0xff] %v2132_v54 }
 0x2d1   :  { %3082 = vst [vmem:[#allocation57_spill] sm:$0xff] %v2148_v53 }
 0x2d4   :  { %v466_v52 = vpop.f32.mrf.mxu2 }
 0x2d5   :  { %v2113_v45 = vsub.f32 %v466_v52, %v1915_v60  ;;  %v2129_v60 = vsub.f32 %v456_v6, %v1881_v37  ;;  %v2145_v37 = vsub.f32 %v446_v33, %v1957_v5  ;;  %v2161_v33 = vsub.f32 %v436_v18, %v1970_v42 }
 0x2d7   :  { %3074 = vst [vmem:[#allocation49_spill] sm:$0xff] %v2113_v45 }
 0x2d8   :  { %3081 = vst [vmem:[#allocation56_spill] sm:$0xff] %v2145_v37 }
 0x2d9   :  { %3085 = vst [vmem:[#allocation60_spill] sm:$0xff] %v2161_v33 }
 0x2dc   :  { %v468_v35 = vpop.f32.mrf.mxu2 }
 0x2dd   :  { %v2108_v47 = vsub.f32 %v468_v35, %v1923_v8  ;;  %v2124_v8 = vsub.f32 %v458_v38, %v1891_v43  ;;  %v2140_v43 = vsub.f32 %v448_v58, %v1959_v11  ;;  %v2156_v58 = vsub.f32 %v438_v19, %v1973_v63 }
 0x2df   :  { %3073 = vst [vmem:[#allocation48_spill] sm:$0xff] %v2108_v47  ;;  %v560_v6 = vpack.c.bf16 %v2140_v43, %v2145_v37  ;;  %v558_v22 = vpack.c.bf16 %v2156_v58, %v2161_v33 }
 0x2e0   :  { %3077 = vst [vmem:[#allocation52_spill] sm:$0xff] %v2124_v8 }
 0x2e1   :  { %3080 = vst [vmem:[#allocation55_spill] sm:$0xff] %v2140_v43 }
 0x2e2   :  { %3084 = vst [vmem:[#allocation59_spill] sm:$0xff] %v2156_v58 }
 0x2e4   :  { %v471_v57 = vpop.f32.mrf.mxu2 }
 0x2e5   :  { %v2102_v0 = vsub.f32 %v471_v57, %v1931_v34  ;;  %v564_v34 = vpack.c.bf16 %v2108_v47, %v2113_v45  ;;  %v2121_v57 = vsub.f32 %v461_v1, %v1899_v48  ;;  %v2137_v48 = vsub.f32 %v451_v39, %v1951_v59 }
 0x2e6   :  { %v2153_v39 = vsub.f32 %v441_v21, %v1963_v23 }
 0x2e7   :  { %3071 = vst [vmem:[#allocation46_spill] sm:$0xff] %v2102_v0  ;;  %v561_v38 = vpack.c.bf16 %v2132_v54, %v2137_v48 }
 0x2e8   :  { %3076 = vst [vmem:[#allocation51_spill] sm:$0xff] %v2121_v57  ;;  %v559_v1 = vpack.c.bf16 %v2148_v53, %v2153_v39 }
 0x2e9   :  { %3079 = vst [vmem:[#allocation54_spill] sm:$0xff] %v2137_v48 }
 0x2ea   :  { %3083 = vst [vmem:[#allocation58_spill] sm:$0xff] %v2153_v39 }
 0x2ec   :  { %v473_v17 = vpop.f32.mrf.mxu2 }
 0x2ed   :  { %v2105_v9 = vsub.f32 %v473_v17, %v1939_v44  ;;  %v563_v44 = vpack.c.bf16 %v2116_v49, %v2121_v57 }
 0x2ef   :  { %3072 = vst [vmem:[#allocation47_spill] sm:$0xff] %v2105_v9  ;;  %v565_v51 = vpack.c.bf16 %v2105_v9, %v2102_v0 }
 0x2f1   :  { %566 = vmatpush.bf16.msrb.mxu3 %v565_v51  ;;  %v562_v51 = vpack.c.bf16 %v2124_v8, %v2129_v60 }
 0x2f5   :  { %567 = vmatpush.bf16.msrb.mxu3 %v564_v34 }
 0x2f9   :  { %568 = vmatpush.bf16.msrb.mxu3 %v563_v44 }
 0x2fd   :  { %569 = vmatpush.bf16.msrb.mxu3 %v562_v51 }
 0x301   :  { %570 = vmatpush.bf16.msrb.mxu3 %v561_v38 }
 0x305   :  { %571 = vmatpush.bf16.msrb.mxu3 %v560_v6 }
 0x309   :  { %572 = vmatpush.bf16.msrb.mxu3 %v559_v1 }
 0x30d   :  { %573 = vmatpush.bf16.msrb.mxu3 %v558_v22 }
 0x310   :  { %574 = vmatmul.bf16.vlgmr.msrb.gmra.mxu3 %v1851_v25 }
 0x320   :  { %579 = vmatmul.bf16.gmra.mxu3 %v1857_v27 }
 0x330   :  { %584 = vmatmul.bf16.gmra.mxu3 %v1863_v29 }
 0x340   :  { %589 = vmatmul.bf16.gmra.mxu3 %v1869_v31 }
 0x350   :  { %594 = vmatmul.bf16.gmra.mxu3 %v1849_v24 }
 0x360   :  { %599 = vmatmul.bf16.gmra.mxu3 %v1855_v26 }
 0x370   :  { %604 = vmatmul.bf16.gmra.mxu3 %v1861_v28 }
 0x380   :  { %609 = vmatmul.bf16.gmra.mxu3 %v1867_v30 }
 0x393   :  { %v575_v18 = vpop.f32.mrf.mxu3 }
 0x39b   :  { %v577_v19 = vpop.f32.mrf.mxu3 }
 0x3a3   :  { %v580_v21 = vpop.f32.mrf.mxu3 }
 0x3ab   :  { %v582_v32 = vpop.f32.mrf.mxu3 }
 0x3b3   :  { %v585_v52 = vpop.f32.mrf.mxu3 }
 0x3bb   :  { %v587_v35 = vpop.f32.mrf.mxu3 }
 0x3c3   :  { %v590_v17 = vpop.f32.mrf.mxu3 }
 0x3cb   :  { %v592_v34 = vpop.f32.mrf.mxu3 }
 0x3d3   :  { %v595_v44 = vpop.f32.mrf.mxu3 }
 0x3db   :  { %v597_v51 = vpop.f32.mrf.mxu3 }
 0x3e3   :  { %v600_v38 = vpop.f32.mrf.mxu3 }
 0x3eb   :  { %v602_v6 = vpop.f32.mrf.mxu3 }
 0x3ec   :  { %v2188_v42 = vsub.f32 %v602_v6, %v2014_v41 }
 0x3ee   :  { %3090 = vst [vmem:[#allocation65_spill] sm:$0xff] %v2188_v42 }
 0x3f3   :  { %v605_v1 = vpop.f32.mrf.mxu3 }
 0x3f4   :  { %v2185_v63 = vsub.f32 %v605_v1, %v2022_v3  ;;  %v2201_v3 = vsub.f32 %v595_v44, %v1988_v56  ;;  %v2217_v56 = vsub.f32 %v585_v52, %v2070_v7  ;;  %v2233_v52 = vsub.f32 %v575_v18, %v2086_v15 }
 0x3f6   :  { %3089 = vst [vmem:[#allocation64_spill] sm:$0xff] %v2185_v63 }
 0x3f7   :  { %3096 = vst [vmem:[#allocation71_spill] sm:$0xff] %v2217_v56 }
 0x3f8   :  { %3100 = vst [vmem:[#allocation75_spill] sm:$0xff] %v2233_v52 }
 0x3fb   :  { %v607_v22 = vpop.f32.mrf.mxu3 }
 0x3fc   :  { %v2180_v36 = vsub.f32 %v607_v22, %v2030_v10 }
 0x3fe   :  { %3088 = vst [vmem:[#allocation63_spill] sm:$0xff] %v2180_v36 }
 0x403   :  { %v610_v61 = vpop.f32.mrf.mxu3 }
 0x404   :  { %v2174_v11 = vsub.f32 %v610_v61, %v2038_v2  ;;  %v703_v61 = vpack.c.bf16 %v2180_v36, %v2185_v63  ;;  %v2193_v2 = vsub.f32 %v600_v38, %v2006_v40  ;;  %v2209_v40 = vsub.f32 %v590_v17, %v2062_v62 }
 0x405   :  { %v2225_v17 = vsub.f32 %v580_v21, %v2078_v12 }
 0x406   :  { %3086 = vst [vmem:[#allocation61_spill] sm:$0xff] %v2174_v11  ;;  %v702_v10 = vpack.c.bf16 %v2188_v42, %v2193_v2 }
 0x407   :  { %3091 = vst [vmem:[#allocation66_spill] sm:$0xff] %v2193_v2 }
 0x408   :  { %3094 = vst [vmem:[#allocation69_spill] sm:$0xff] %v2209_v40 }
 0x409   :  { %3098 = vst [vmem:[#allocation73_spill] sm:$0xff] %v2225_v17 }
 0x40b   :  { %v612_v59 = vpop.f32.mrf.mxu3 }
 0x40c   :  { %v2177_v5 = vsub.f32 %v612_v59, %v2046_v4  ;;  %v2196_v59 = vsub.f32 %v597_v51, %v1998_v55  ;;  %v2212_v55 = vsub.f32 %v587_v35, %v2073_v14  ;;  %v2228_v35 = vsub.f32 %v577_v19, %v2089_v16 }
 0x40e   :  { %3087 = vst [vmem:[#allocation62_spill] sm:$0xff] %v2177_v5  ;;  %v704_v23 = vpack.c.bf16 %v2177_v5, %v2174_v11  ;;  %v701_v41 = vpack.c.bf16 %v2196_v59, %v2201_v3  ;;  %v699_v44 = vpack.c.bf16 %v2212_v55, %v2217_v56 }
 0x40f   :  { %3092 = vst [vmem:[#allocation67_spill] sm:$0xff] %v2196_v59 }
 0x410   :  { %705 = vmatpush.bf16.msrb.mxu0 %v704_v23  ;;  %v2204_v23 = vsub.f32 %v592_v34, %v2065_v46  ;;  %3095 = vst [vmem:[#allocation70_spill] sm:$0xff] %v2212_v55  ;;  %v2220_v34 = vsub.f32 %v582_v32, %v2081_v13  ;;  %v697_v32 = vpack.c.bf16 %v2228_v35, %v2233_v52 }
 0x411   :  { %3099 = vst [vmem:[#allocation74_spill] sm:$0xff] %v2228_v35 }
 0x412   :  { %3093 = vst [vmem:[#allocation68_spill] sm:$0xff] %v2204_v23  ;;  %v700_v4 = vpack.c.bf16 %v2204_v23, %v2209_v40  ;;  %v698_v51 = vpack.c.bf16 %v2220_v34, %v2225_v17 }
 0x413   :  { %3097 = vst [vmem:[#allocation72_spill] sm:$0xff] %v2220_v34 }
 0x414   :  { %706 = vmatpush.bf16.msrb.mxu0 %v703_v61 }
 0x418   :  { %707 = vmatpush.bf16.msrb.mxu0 %v702_v10 }
 0x41c   :  { %708 = vmatpush.bf16.msrb.mxu0 %v701_v41 }
 0x420   :  { %709 = vmatpush.bf16.msrb.mxu0 %v700_v4 }
 0x424   :  { %710 = vmatpush.bf16.msrb.mxu0 %v699_v44 }
 0x428   :  { %711 = vmatpush.bf16.msrb.mxu0 %v698_v51 }
 0x42c   :  { %712 = vmatpush.bf16.msrb.mxu0 %v697_v32 }
 0x42f   :  { %713 = vmatmul.bf16.vlgmr.msrb.gmra.mxu0 %v1851_v25 }
 0x43f   :  { %718 = vmatmul.bf16.gmra.mxu0 %v1857_v27 }
 0x44f   :  { %723 = vmatmul.bf16.gmra.mxu0 %v1863_v29 }
 0x45f   :  { %728 = vmatmul.bf16.gmra.mxu0 %v1869_v31 }
 0x46f   :  { %733 = vmatmul.bf16.gmra.mxu0 %v1849_v24 }
 0x47f   :  { %738 = vmatmul.bf16.gmra.mxu0 %v1855_v26 }
 0x48f   :  { %743 = vmatmul.bf16.gmra.mxu0 %v1861_v28 }
 0x49f   :  { %748 = vmatmul.bf16.gmra.mxu0 %v1867_v30 }
 0x4ac   :  { %v714_v18 = vpop.f32.mrf.mxu0 }
 0x4b4   :  { %v716_v19 = vpop.f32.mrf.mxu0 }
 0x4bc   :  { %v719_v21 = vpop.f32.mrf.mxu0 }
 0x4c4   :  { %v721_v38 = vpop.f32.mrf.mxu0 }
 0x4cc   :  { %v724_v6 = vpop.f32.mrf.mxu0 }
 0x4d4   :  { %v726_v1 = vpop.f32.mrf.mxu0 }
 0x4dc   :  { %v729_v22 = vpop.f32.mrf.mxu0 }
 0x4e4   :  { %v731_v61 = vpop.f32.mrf.mxu0 }
 0x4ec   :  { %v734_v10 = vpop.f32.mrf.mxu0 }
 0x4f4   :  { %v736_v41 = vpop.f32.mrf.mxu0 }
 0x4fc   :  { %v739_v4 = vpop.f32.mrf.mxu0 }
 0x504   :  { %v741_v44 = vpop.f32.mrf.mxu0 }
 0x505   :  { %v2260_v15 = vsub.f32 %v741_v44, %v2116_v49 }
 0x50c   :  { %v744_v51 = vpop.f32.mrf.mxu0 }
 0x50d   :  { %v2257_v16 = vsub.f32 %v744_v51, %v2113_v45  ;;  %v2273_v51 = vsub.f32 %v734_v10, %v2129_v60  ;;  %v2289_v10 = vsub.f32 %v724_v6, %v2145_v37  ;;  %v2305_v6 = vsub.f32 %v714_v18, %v2161_v33 }
 0x50f   :  { %3107 = vst [vmem:[#allocation82_spill] sm:$0xff] %v2289_v10 }
 0x510   :  { %3111 = vst [vmem:[#allocation86_spill] sm:$0xff] %v2305_v6 }
 0x514   :  { %v746_v32 = vpop.f32.mrf.mxu0 }
 0x515   :  { %v2252_v13 = vsub.f32 %v746_v32, %v2108_v47 }
 0x517   :  { %3103 = vst [vmem:[#allocation78_spill] sm:$0xff] %v2252_v13 }
 0x51c   :  { %v749_v46 = vpop.f32.mrf.mxu0 }
 0x51d   :  { %v2246_v14 = vsub.f32 %v749_v46, %v2102_v0  ;;  %v842_v46 = vpack.c.bf16 %v2252_v13, %v2257_v16  ;;  %v2265_v0 = vsub.f32 %v739_v4, %v2121_v57  ;;  %v2281_v4 = vsub.f32 %v729_v22, %v2137_v48 }
 0x51e   :  { %v2297_v22 = vsub.f32 %v719_v21, %v2153_v39 }
 0x51f   :  { %3101 = vst [vmem:[#allocation76_spill] sm:$0xff] %v2246_v14  ;;  %v841_v32 = vpack.c.bf16 %v2260_v15, %v2265_v0 }
 0x520   :  { %3105 = vst [vmem:[#allocation80_spill] sm:$0xff] %v2281_v4 }
 0x521   :  { %3109 = vst [vmem:[#allocation84_spill] sm:$0xff] %v2297_v22 }
 0x524   :  { %v751_v62 = vpop.f32.mrf.mxu0 }
 0x525   :  { %v2249_v7 = vsub.f32 %v751_v62, %v2105_v9  ;;  %v2268_v62 = vsub.f32 %v736_v41, %v2124_v8  ;;  %v2284_v41 = vsub.f32 %v726_v1, %v2140_v43  ;;  %v2300_v1 = vsub.f32 %v716_v19, %v2156_v58 }
 0x527   :  { %3102 = vst [vmem:[#allocation77_spill] sm:$0xff] %v2249_v7  ;;  %v843_v12 = vpack.c.bf16 %v2249_v7, %v2246_v14  ;;  %v840_v44 = vpack.c.bf16 %v2268_v62, %v2273_v51 }
 0x528   :  { %3106 = vst [vmem:[#allocation81_spill] sm:$0xff] %v2284_v41 }
 0x529   :  { %844 = vmatpush.bf16.msrb.mxu1 %v843_v12  ;;  %v2276_v12 = vsub.f32 %v731_v61, %v2132_v54  ;;  %v2292_v61 = vsub.f32 %v721_v38, %v2148_v53  ;;  %3110 = vst [vmem:[#allocation85_spill] sm:$0xff] %v2300_v1  ;;  %v836_v38 = vpack.c.bf16 %v2300_v1, %v2305_v6 }
 0x52b   :  { %3104 = vst [vmem:[#allocation79_spill] sm:$0xff] %v2276_v12 }
 0x52c   :  { %3108 = vst [vmem:[#allocation83_spill] sm:$0xff] %v2292_v61 }
 0x52d   :  { %845 = vmatpush.bf16.msrb.mxu1 %v842_v46  ;;  %v839_v46 = vpack.c.bf16 %v2276_v12, %v2281_v4 }
 0x531   :  { %846 = vmatpush.bf16.msrb.mxu1 %v841_v32  ;;  %v838_v32 = vpack.c.bf16 %v2284_v41, %v2289_v10 }
 0x535   :  { %847 = vmatpush.bf16.msrb.mxu1 %v840_v44  ;;  %v837_v44 = vpack.c.bf16 %v2292_v61, %v2297_v22 }
 0x539   :  { %848 = vmatpush.bf16.msrb.mxu1 %v839_v46 }
 0x53d   :  { %849 = vmatpush.bf16.msrb.mxu1 %v838_v32 }
 0x541   :  { %850 = vmatpush.bf16.msrb.mxu1 %v837_v44 }
 0x545   :  { %851 = vmatpush.bf16.msrb.mxu1 %v836_v38 }
 0x548   :  { %852 = vmatmul.bf16.vlgmr.msrb.gmra.mxu1 %v1851_v25 }
 0x558   :  { %857 = vmatmul.bf16.gmra.mxu1 %v1857_v27 }
 0x568   :  { %862 = vmatmul.bf16.gmra.mxu1 %v1863_v29 }
 0x578   :  { %867 = vmatmul.bf16.gmra.mxu1 %v1869_v31 }
 0x588   :  { %872 = vmatmul.bf16.gmra.mxu1 %v1849_v24 }
 0x598   :  { %877 = vmatmul.bf16.gmra.mxu1 %v1855_v26 }
 0x5a8   :  { %882 = vmatmul.bf16.gmra.mxu1 %v1861_v28 }
 0x5b8   :  { %887 = vmatmul.bf16.gmra.mxu1 %v1867_v30 }
 0x5c5   :  { %v853_v18 = vpop.f32.mrf.mxu1 }
 0x5cd   :  { %v855_v19 = vpop.f32.mrf.mxu1 }
 0x5d5   :  { %v858_v21 = vpop.f32.mrf.mxu1 }
 0x5dd   :  { %v860_v46 = vpop.f32.mrf.mxu1 }
 0x5e5   :  { %v863_v32 = vpop.f32.mrf.mxu1 }
 0x5ed   :  { %v865_v44 = vpop.f32.mrf.mxu1 }
 0x5f5   :  { %v868_v38 = vpop.f32.mrf.mxu1 }
 0x5fd   :  { %v870_v54 = vpop.f32.mrf.mxu1 }
 0x605   :  { %v873_v48 = vpop.f32.mrf.mxu1 }
 0x60d   :  { %v875_v43 = vpop.f32.mrf.mxu1 }
 0x615   :  { %v878_v37 = vpop.f32.mrf.mxu1 }
 0x61d   :  { %v880_v53 = vpop.f32.mrf.mxu1 }
 0x61e   :  { %v2332_v8 = vsub.f32 %v880_v53, %v2188_v42 }
 0x625   :  { %v883_v39 = vpop.f32.mrf.mxu1 }
 0x626   :  { %v2329_v20 = vsub.f32 %v883_v39, %v2185_v63  ;;  %v2345_v39 = vsub.f32 %v873_v48, %v2201_v3  ;;  %v2361_v48 = vsub.f32 %v863_v32, %v2217_v56  ;;  %v2377_v32 = vsub.f32 %v853_v18, %v2233_v52 }
 0x628   :  { %3116 = vst [vmem:[#allocation91_spill] sm:$0xff] %v2361_v48 }
 0x62d   :  { %v885_v58 = vpop.f32.mrf.mxu1 }
 0x62e   :  { %v2324_v49 = vsub.f32 %v885_v58, %v2180_v36 }
 0x635   :  { %v888_v33 = vpop.f32.mrf.mxu1 }
 0x636   :  { %v2318_v47 = vsub.f32 %v888_v33, %v2174_v11  ;;  %v981_v33 = vpack.c.bf16 %v2324_v49, %v2329_v20  ;;  %v2337_v11 = vsub.f32 %v878_v37, %v2193_v2  ;;  %v2353_v37 = vsub.f32 %v868_v38, %v2209_v40 }
 0x637   :  { %v2369_v38 = vsub.f32 %v858_v21, %v2225_v17 }
 0x638   :  { %3112 = vst [vmem:[#allocation87_spill] sm:$0xff] %v2318_v47  ;;  %v980_v58 = vpack.c.bf16 %v2332_v8, %v2337_v11 }
 0x639   :  { %3114 = vst [vmem:[#allocation89_spill] sm:$0xff] %v2353_v37 }
 0x63d   :  { %v890_v9 = vpop.f32.mrf.mxu1 }
 0x63e   :  { %v2321_v45 = vsub.f32 %v890_v9, %v2177_v5  ;;  %v2340_v9 = vsub.f32 %v875_v43, %v2196_v59  ;;  %v2356_v43 = vsub.f32 %v865_v44, %v2212_v55  ;;  %v2372_v44 = vsub.f32 %v855_v19, %v2228_v35 }
 0x640   :  { %v982_v57 = vpack.c.bf16 %v2321_v45, %v2318_v47  ;;  %v979_v53 = vpack.c.bf16 %v2340_v9, %v2345_v39  ;;  %3115 = vst [vmem:[#allocation90_spill] sm:$0xff] %v2356_v43 }
 0x642   :  { %983 = vmatpush.bf16.msra.mxu2 %v982_v57  ;;  %v2348_v57 = vsub.f32 %v870_v54, %v2204_v23  ;;  %v2364_v54 = vsub.f32 %v860_v46, %v2220_v34  ;;  %v975_v46 = vpack.c.bf16 %v2372_v44, %v2377_v32 }
 0x644   :  { %3113 = vst [vmem:[#allocation88_spill] sm:$0xff] %v2348_v57 }
 0x646   :  { %984 = vmatpush.bf16.msra.mxu2 %v981_v33  ;;  %v978_v33 = vpack.c.bf16 %v2348_v57, %v2353_v37 }
 0x64a   :  { %985 = vmatpush.bf16.msra.mxu2 %v980_v58  ;;  %v977_v58 = vpack.c.bf16 %v2356_v43, %v2361_v48 }
 0x64e   :  { %986 = vmatpush.bf16.msra.mxu2 %v979_v53  ;;  %v976_v53 = vpack.c.bf16 %v2364_v54, %v2369_v38 }
 0x652   :  { %987 = vmatpush.bf16.msra.mxu2 %v978_v33 }
 0x656   :  { %988 = vmatpush.bf16.msra.mxu2 %v977_v58 }
 0x65a   :  { %989 = vmatpush.bf16.msra.mxu2 %v976_v53 }
 0x65e   :  { %990 = vmatpush.bf16.msra.mxu2 %v975_v46 }
 0x661   :  { %991 = vmatmul.bf16.vlgmr.msra.gmra.mxu2 %v1851_v25 }
 0x671   :  { %996 = vmatmul.bf16.gmra.mxu2 %v1857_v27 }
 0x681   :  { %1001 = vmatmul.bf16.gmra.mxu2 %v1863_v29 }
 0x691   :  { %1006 = vmatmul.bf16.gmra.mxu2 %v1869_v31 }
 0x6a1   :  { %1011 = vmatmul.bf16.gmra.mxu2 %v1849_v24 }
 0x6b1   :  { %1016 = vmatmul.bf16.gmra.mxu2 %v1855_v26 }
 0x6c1   :  { %1021 = vmatmul.bf16.gmra.mxu2 %v1861_v28 }
 0x6d1   :  { %1026 = vmatmul.bf16.gmra.mxu2 %v1867_v30 }
 0x6e4   :  { %v992_v18 = vpop.f32.mrf.mxu2 }
 0x6ec   :  { %v994_v19 = vpop.f32.mrf.mxu2 }
 0x6f4   :  { %v997_v21 = vpop.f32.mrf.mxu2 }
 0x6fc   :  { %v999_v33 = vpop.f32.mrf.mxu2 }
 0x704   :  { %v1002_v58 = vpop.f32.mrf.mxu2 }
 0x70c   :  { %v1004_v53 = vpop.f32.mrf.mxu2 }
 0x714   :  { %v1007_v46 = vpop.f32.mrf.mxu2 }
 0x71c   :  { %v1009_v23 = vpop.f32.mrf.mxu2 }
 0x724   :  { %v1012_v40 = vpop.f32.mrf.mxu2 }
 0x72c   :  { %v1014_v55 = vpop.f32.mrf.mxu2 }
 0x734   :  { %v1017_v56 = vpop.f32.mrf.mxu2 }
 0x73c   :  { %v1019_v34 = vpop.f32.mrf.mxu2 }
 0x73d   :  { %v2404_v50 = vsub.f32 %v1019_v34, %v2260_v15 }
 0x744   :  { %v1022_v17 = vpop.f32.mrf.mxu2 }
 0x745   :  { %v2401_v59 = vsub.f32 %v1022_v17, %v2257_v16  ;;  %v2417_v17 = vsub.f32 %v1012_v40, %v2273_v51  ;;  %v2433_v40 = vsub.f32 %v1002_v58, %v2289_v10  ;;  %v2449_v58 = vsub.f32 %v992_v18, %v2305_v6 }
 0x747   :  { %3120 = vst [vmem:[#allocation95_spill] sm:$0xff] %v2401_v59 }
 0x748   :  { %3124 = vst [vmem:[#allocation99_spill] sm:$0xff] %v2433_v40 }
 0x74c   :  { %v1024_v35 = vpop.f32.mrf.mxu2 }
 0x74d   :  { %v2396_v42 = vsub.f32 %v1024_v35, %v2252_v13 }
 0x74f   :  { %3119 = vst [vmem:[#allocation94_spill] sm:$0xff] %v2396_v42 }
 0x754   :  { %v1027_v52 = vpop.f32.mrf.mxu2 }
 0x755   :  { %v2390_v36 = vsub.f32 %v1027_v52, %v2246_v14  ;;  %v1120_v52 = vpack.c.bf16 %v2396_v42, %v2401_v59  ;;  %v2409_v14 = vsub.f32 %v1017_v56, %v2265_v0  ;;  %v2425_v56 = vsub.f32 %v1007_v46, %v2281_v4 }
 0x756   :  { %v2441_v46 = vsub.f32 %v997_v21, %v2297_v22 }
 0x757   :  { %3117 = vst [vmem:[#allocation92_spill] sm:$0xff] %v2390_v36  ;;  %v1119_v35 = vpack.c.bf16 %v2404_v50, %v2409_v14 }
 0x758   :  { %3122 = vst [vmem:[#allocation97_spill] sm:$0xff] %v2425_v56 }
 0x75c   :  { %v1029_v5 = vpop.f32.mrf.mxu2 }
 0x75d   :  { %v2393_v63 = vsub.f32 %v1029_v5, %v2249_v7  ;;  %v2412_v5 = vsub.f32 %v1014_v55, %v2268_v62  ;;  %v2428_v55 = vsub.f32 %v1004_v53, %v2284_v41  ;;  %v2444_v53 = vsub.f32 %v994_v19, %v2300_v1 }
 0x75f   :  { %3118 = vst [vmem:[#allocation93_spill] sm:$0xff] %v2393_v63  ;;  %v1121_v2 = vpack.c.bf16 %v2393_v63, %v2390_v36  ;;  %v1118_v34 = vpack.c.bf16 %v2412_v5, %v2417_v17 }
 0x760   :  { %3123 = vst [vmem:[#allocation98_spill] sm:$0xff] %v2428_v55 }
 0x761   :  { %1122 = vmatpush.bf16.msra.mxu3 %v1121_v2  ;;  %v2420_v2 = vsub.f32 %v1009_v23, %v2276_v12  ;;  %v2436_v23 = vsub.f32 %v999_v33, %v2292_v61  ;;  %v1114_v33 = vpack.c.bf16 %v2444_v53, %v2449_v58 }
 0x763   :  { %3121 = vst [vmem:[#allocation96_spill] sm:$0xff] %v2420_v2 }
 0x765   :  { %1123 = vmatpush.bf16.msra.mxu3 %v1120_v52  ;;  %v1117_v52 = vpack.c.bf16 %v2420_v2, %v2425_v56 }
 0x769   :  { %1124 = vmatpush.bf16.msra.mxu3 %v1119_v35  ;;  %v1116_v35 = vpack.c.bf16 %v2428_v55, %v2433_v40 }
 0x76d   :  { %1125 = vmatpush.bf16.msra.mxu3 %v1118_v34  ;;  %v1115_v34 = vpack.c.bf16 %v2436_v23, %v2441_v46 }
 0x771   :  { %1126 = vmatpush.bf16.msra.mxu3 %v1117_v52 }
 0x775   :  { %1127 = vmatpush.bf16.msra.mxu3 %v1116_v35 }
 0x779   :  { %1128 = vmatpush.bf16.msra.mxu3 %v1115_v34 }
 0x77d   :  { %1129 = vmatpush.bf16.msra.mxu3 %v1114_v33 }
 0x780   :  { %1130 = vmatmul.bf16.vlgmr.msra.gmra.mxu3 %v1851_v25 }
 0x790   :  { %1135 = vmatmul.bf16.gmra.mxu3 %v1857_v27 }
 0x7a0   :  { %1140 = vmatmul.bf16.gmra.mxu3 %v1863_v29 }
 0x7b0   :  { %1145 = vmatmul.bf16.gmra.mxu3 %v1869_v31 }
 0x7c0   :  { %1150 = vmatmul.bf16.gmra.mxu3 %v1849_v24 }
 0x7d0   :  { %1155 = vmatmul.bf16.gmra.mxu3 %v1855_v26 }
 0x7e0   :  { %1160 = vmatmul.bf16.gmra.mxu3 %v1861_v28 }
 0x7f0   :  { %1165 = vmatmul.bf16.gmra.mxu3 %v1867_v30 }
 0x803   :  { %v1131_v18 = vpop.f32.mrf.mxu3 }
 0x80b   :  { %v1133_v19 = vpop.f32.mrf.mxu3 }
 0x813   :  { %v1136_v21 = vpop.f32.mrf.mxu3 }
 0x81b   :  { %v1138_v52 = vpop.f32.mrf.mxu3 }
 0x823   :  { %v1141_v35 = vpop.f32.mrf.mxu3 }
 0x82b   :  { %v1143_v34 = vpop.f32.mrf.mxu3 }
 0x833   :  { %v1146_v33 = vpop.f32.mrf.mxu3 }
 0x83b   :  { %v1148_v12 = vpop.f32.mrf.mxu3 }
 0x843   :  { %v1151_v4 = vpop.f32.mrf.mxu3 }
 0x84b   :  { %v1153_v41 = vpop.f32.mrf.mxu3 }
 0x853   :  { %v1156_v10 = vpop.f32.mrf.mxu3 }
 0x85b   :  { %v1158_v61 = vpop.f32.mrf.mxu3 }
 0x85c   :  { %v2476_v59 = vsub.f32 %v1158_v61, %v2332_v8 }
 0x863   :  { %v1161_v22 = vpop.f32.mrf.mxu3 }
 0x864   :  { %v2473_v13 = vsub.f32 %v1161_v22, %v2329_v20  ;;  %v2489_v22 = vsub.f32 %v1151_v4, %v2345_v39  ;;  %v2505_v4 = vsub.f32 %v1141_v35, %v2361_v48  ;;  %v2521_v35 = vsub.f32 %v1131_v18, %v2377_v32 }
 0x866   :  { %3128 = vst [vmem:[#allocation103_spill] sm:$0xff] %v2489_v22 }
 0x867   :  { %3132 = vst [vmem:[#allocation107_spill] sm:$0xff] %v2505_v4 }
 0x86b   :  { %v1163_v24 = vpop.f32.mrf.mxu3 }
 0x86c   :  { %v2468_v36 = vsub.f32 %v1163_v24, %v2324_v49 }
 0x86e   :  { %3126 = vst [vmem:[#allocation101_spill] sm:$0xff] %v2468_v36 }
 0x873   :  { %v1166_v1 = vpop.f32.mrf.mxu3 }
 0x874   :  { %v2462_v63 = vsub.f32 %v1166_v1, %v2318_v47  ;;  %v1259_v1 = vpack.c.bf16 %v2468_v36, %v2473_v13  ;;  %v2481_v47 = vsub.f32 %v1156_v10, %v2337_v11  ;;  %v2497_v10 = vsub.f32 %v1146_v33, %v2353_v37 }
 0x875   :  { %v2513_v33 = vsub.f32 %v1136_v21, %v2369_v38 }
 0x876   :  { %3125 = vst [vmem:[#allocation100_spill] sm:$0xff] %v2462_v63  ;;  %v1258_v24 = vpack.c.bf16 %v2476_v59, %v2481_v47 }
 0x877   :  { %3130 = vst [vmem:[#allocation105_spill] sm:$0xff] %v2497_v10 }
 0x87b   :  { %v1168_v6 = vpop.f32.mrf.mxu3 }
 0x87c   :  { %v2465_v7 = vsub.f32 %v1168_v6, %v2321_v45  ;;  %v2484_v6 = vsub.f32 %v1153_v41, %v2340_v9  ;;  %v2500_v41 = vsub.f32 %v1143_v34, %v2356_v43  ;;  %v2516_v34 = vsub.f32 %v1133_v19, %v2372_v44  ;;  %v2529_v19 = vld [vmem:[#allocation2 + $0x20] sm:$0xff] }
 0x87d   :  { %v3137_v43 = vld [vmem:[#allocation31_spill] sm:$0xff] }
 0x87e   :  { %v1260_v42 = vpack.c.bf16 %v2465_v7, %v2462_v63  ;;  %3127 = vst [vmem:[#allocation102_spill] sm:$0xff] %v2484_v6  ;;  %v1257_v61 = vpack.c.bf16 %v2484_v6, %v2489_v22 }
 0x87f   :  { %3131 = vst [vmem:[#allocation106_spill] sm:$0xff] %v2500_v41 }
 0x880   :  { %1261 = vmatpush.bf16.msra.mxu0 %v1260_v42  ;;  %v2492_v42 = vsub.f32 %v1148_v12, %v2348_v57  ;;  %v2508_v12 = vsub.f32 %v1138_v52, %v2364_v54  ;;  %v1253_v52 = vpack.c.bf16 %v2516_v34, %v2521_v35 }
 0x882   :  { %3129 = vst [vmem:[#allocation104_spill] sm:$0xff] %v2492_v42 }
 0x883   :  { %3133 = vst [vmem:[#allocation108_spill] sm:$0xff] %v2508_v12 }
 0x884   :  { %1262 = vmatpush.bf16.msra.mxu0 %v1259_v1  ;;  %v1256_v1 = vpack.c.bf16 %v2492_v42, %v2497_v10  ;;  %v3134_v42 = vld [vmem:[#allocation30_spill] sm:$0xff] }
 0x888   :  { %1263 = vmatpush.bf16.msra.mxu0 %v1258_v24  ;;  %v1255_v24 = vpack.c.bf16 %v2500_v41, %v2505_v4 }
 0x88c   :  { %1264 = vmatpush.bf16.msra.mxu0 %v1257_v61  ;;  %v1254_v61 = vpack.c.bf16 %v2508_v12, %v2513_v33 }
 0x890   :  { %1265 = vmatpush.bf16.msra.mxu0 %v1256_v1 }
 0x894   :  { %1266 = vmatpush.bf16.msra.mxu0 %v1255_v24 }
 0x898   :  { %1267 = vmatpush.bf16.msra.mxu0 %v1254_v61 }
 0x89c   :  { %1268 = vmatpush.bf16.msra.mxu0 %v1253_v52 }
 0x89f   :  { %1269 = vmatmul.bf16.vlgmr.msra.gmra.mxu0 %v1851_v25 }
 0x8af   :  { %1274 = vmatmul.bf16.gmra.mxu0 %v1857_v27 }
 0x8bf   :  { %1279 = vmatmul.bf16.gmra.mxu0 %v1863_v29 }
 0x8cf   :  { %1284 = vmatmul.bf16.gmra.mxu0 %v1869_v31 }
 0x8df   :  { %1289 = vmatmul.bf16.gmra.mxu0 %v2529_v19 }
 0x8ef   :  { %1294 = vmatmul.bf16.gmra.mxu0 %v1855_v26 }
 0x8ff   :  { %1299 = vmatmul.bf16.gmra.mxu0 %v1861_v28  ;;  %v2563_v28 = vstv %s1618_s29 }
 0x90f   :  { %1304 = vmatmul.bf16.gmra.mxu0 %v1867_v30 }
 0x91c   :  { %v1270_v18 = vpop.f32.mrf.mxu0 }
 0x91d   :  { %v2536_v25 = vsub.f32 %v1270_v18, %v2449_v58 }
 0x924   :  { %v1272_v21 = vpop.f32.mrf.mxu0 }
 0x925   :  { %v2539_v27 = vsub.f32 %v1272_v21, %v2444_v53 }
 0x92c   :  { %v1275_v31 = vpop.f32.mrf.mxu0 }
 0x92d   :  { %v2544_v24 = vsub.f32 %v1275_v31, %v2441_v46 }
 0x934   :  { %v1277_v1 = vpop.f32.mrf.mxu0 }
 0x935   :  { %v2547_v26 = vsub.f32 %v1277_v1, %v2436_v23  ;;  %v2559_v1 = vstv %s1617_s28 }
 0x936   :  { %v518_v29 = vmul.f32 %v2559_v1, %v2129_v60  ;;  %v2578_v60 = vstv %s1620_s4 }
 0x938   :  { %v534_v57 = vadd.f32 %v518_v29, %v3134_v42  ;;  %v2584_v42 = vstv %s1621_s5  ;;  %v3135_v29 = vld [vmem:[#allocation52_spill] sm:$0xff] }
 0x93c   :  { %v1280_v30 = vpop.f32.mrf.mxu0 }
 0x93d   :  { %v2552_v52 = vsub.f32 %v1280_v30, %v2433_v40  ;;  %v657_v30 = vmul.f32 %v2563_v28, %v2201_v3  ;;  %v935_v3 = vmul.f32 %v2578_v60, %v2345_v39 }
 0x944   :  { %v1282_v61 = vpop.f32.mrf.mxu0 }
 0x945   :  { %v2555_v18 = vsub.f32 %v1282_v61, %v2428_v55  ;;  %v2567_v61 = vstv %s1619_s30  ;;  %v673_v55 = vadd.f32 %v657_v30, %v534_v57 }
 0x946   :  { %v796_v10 = vmul.f32 %v2567_v61, %v2273_v51  ;;  %v519_v51 = vmul.f32 %v2559_v1, %v3135_v29  ;;  %v797_v48 = vmul.f32 %v2567_v61, %v2268_v62  ;;  %v1075_v62 = vmul.f32 %v2584_v42, %v2412_v5 }
 0x948   :  { %v535_v40 = vadd.f32 %v519_v51, %v3137_v43 }
 0x94c   :  { %v1285_v31 = vpop.f32.mrf.mxu0 }
 0x94d   :  { %v2573_v37 = vsub.f32 %v1285_v31, %v2425_v56  ;;  %v812_v31 = vadd.f32 %v796_v10, %v673_v55  ;;  %v3136_v56 = vld [vmem:[#allocation67_spill] sm:$0xff]  ;;  %v2602_v10 = vstv %s1623_s7 }
 0x94e   :  { %v658_v57 = vmul.f32 %v2563_v28, %v3136_v56  ;;  %v936_v56 = vmul.f32 %v2578_v60, %v2340_v9 }
 0x94f   :  { %v951_v30 = vadd.f32 %v935_v3, %v812_v31 }
 0x950   :  { %v674_v12 = vadd.f32 %v658_v57, %v535_v40 }
 0x952   :  { %v813_v51 = vadd.f32 %v797_v48, %v674_v12 }
 0x954   :  { %v1287_v21 = vpop.f32.mrf.mxu0  ;;  %v952_v40 = vadd.f32 %v936_v56, %v813_v51  ;;  %v3141_v51 = vld [vmem:[#allocation50_spill] sm:$0xff] }
 0x955   :  { %v2576_v41 = vsub.f32 %v1287_v21, %v2420_v2  ;;  %v1074_v21 = vmul.f32 %v2584_v42, %v2417_v17  ;;  %v2590_v2 = vstv %s1622_s6 }
 0x956   :  { %v1213_v39 = vmul.f32 %v2590_v2, %v2489_v22  ;;  %v3138_v22 = vld [vmem:[#allocation51_spill] sm:$0xff]  ;;  %v1214_v9 = vmul.f32 %v2590_v2, %v2484_v6 }
 0x957   :  { %v1090_v29 = vadd.f32 %v1074_v21, %v951_v30  ;;  %v520_v43 = vmul.f32 %v2559_v1, %v3138_v22  ;;  %v3140_v30 = vld [vmem:[#allocation32_spill] sm:$0xff]  ;;  %v1091_v22 = vadd.f32 %v1075_v62, %v952_v40  ;;  %v3142_v62 = vld [vmem:[#allocation65_spill] sm:$0xff] }
 0x959   :  { %v1229_v3 = vadd.f32 %v1213_v39, %v1090_v29  ;;  %v536_v39 = vadd.f32 %v520_v43, %v3140_v30  ;;  %v798_v29 = vmul.f32 %v2567_v61, %v2265_v0  ;;  %v1076_v43 = vmul.f32 %v2584_v42, %v2409_v14 }
 0x95a   :  { %v799_v30 = vmul.f32 %v2567_v61, %v2260_v15 }
 0x95c   :  { %v1290_v4 = vpop.f32.mrf.mxu0 }
 0x95d   :  { %v2600_v55 = vsub.f32 %v1290_v4, %v2417_v17  ;;  %v3139_v17 = vld [vmem:[#allocation66_spill] sm:$0xff] }
 0x95e   :  { %v659_v4 = vmul.f32 %v2563_v28, %v3139_v17  ;;  %v521_v17 = vmul.f32 %v2559_v1, %v3141_v51 }
 0x95f   :  { %v1352_v31 = vmul.f32 %v2602_v10, %v2600_v55 }
 0x960   :  { %v675_v12 = vadd.f32 %v659_v4, %v536_v39 }
 0x961   :  { %v2612_v21 = vadd.f32 %v1352_v31, %v1229_v3  ;;  %v937_v3 = vmul.f32 %v2578_v60, %v2337_v11  ;;  %v1230_v31 = vadd.f32 %v1214_v9, %v1091_v22  ;;  %v1215_v11 = vmul.f32 %v2590_v2, %v2481_v47  ;;  %v3143_v9 = vld [vmem:[#allocation33_spill] sm:$0xff] }
 0x962   :  { %v814_v6 = vadd.f32 %v798_v29, %v675_v12  ;;  %v938_v12 = vmul.f32 %v2578_v60, %v2332_v8  ;;  %v1216_v8 = vmul.f32 %v2590_v2, %v2476_v59 }
 0x964   :  { %v1292_v57 = vpop.f32.mrf.mxu0  ;;  %v953_v4 = vadd.f32 %v937_v3, %v814_v6  ;;  %v3144_v3 = vld [vmem:[#allocation49_spill] sm:$0xff] }
 0x965   :  { %v2622_v48 = vsub.f32 %v1292_v57, %v2412_v5  ;;  %v660_v5 = vmul.f32 %v2563_v28, %v3142_v62  ;;  %v537_v57 = vadd.f32 %v521_v17, %v3143_v9  ;;  %v1077_v17 = vmul.f32 %v2584_v42, %v2404_v50 }
 0x966   :  { %v1092_v39 = vadd.f32 %v1076_v43, %v953_v4  ;;  %v3145_v43 = vld [vmem:[#allocation64_spill] sm:$0xff]  ;;  %v3146_v4 = vld [vmem:[#allocation34_spill] sm:$0xff] }
 0x967   :  { %v1353_v56 = vmul.f32 %v2602_v10, %v2622_v48  ;;  %v676_v22 = vadd.f32 %v660_v5, %v537_v57 }
 0x969   :  { %v2632_v0 = vadd.f32 %v1353_v56, %v1230_v31  ;;  %v1231_v31 = vadd.f32 %v1215_v11, %v1092_v39  ;;  %v522_v56 = vmul.f32 %v2559_v1, %v3144_v3  ;;  %v815_v51 = vadd.f32 %v799_v30, %v676_v22 }
 0x96a   :  { %v939_v39 = vmul.f32 %v2578_v60, %v2329_v20  ;;  %v1217_v20 = vmul.f32 %v2590_v2, %v2473_v13 }
 0x96b   :  { %v954_v62 = vadd.f32 %v938_v12, %v815_v51  ;;  %v538_v11 = vadd.f32 %v522_v56, %v3146_v4  ;;  %v3148_v56 = vld [vmem:[#allocation95_spill] sm:$0xff] }
 0x96c   :  { %v1295_v40 = vpop.f32.mrf.mxu0  ;;  %v1078_v51 = vmul.f32 %v2584_v42, %v3148_v56 }
 0x96d   :  { %v2642_v29 = vsub.f32 %v1295_v40, %v2409_v14  ;;  %v661_v14 = vmul.f32 %v2563_v28, %v3145_v43  ;;  %v800_v40 = vmul.f32 %v2567_v61, %v2257_v16  ;;  %v1093_v9 = vadd.f32 %v1077_v17, %v954_v62  ;;  %v3149_v17 = vld [vmem:[#allocation63_spill] sm:$0xff] }
 0x96e   :  { %v3150_v62 = vld [vmem:[#allocation35_spill] sm:$0xff] }
 0x96f   :  { %v1354_v6 = vmul.f32 %v2602_v10, %v2642_v29  ;;  %v677_v30 = vadd.f32 %v661_v14, %v538_v11  ;;  %v1232_v22 = vadd.f32 %v1216_v8, %v1093_v9 }
 0x971   :  { %v2652_v15 = vadd.f32 %v1354_v6, %v1231_v31  ;;  %v3147_v31 = vld [vmem:[#allocation48_spill] sm:$0xff]  ;;  %v816_v3 = vadd.f32 %v800_v40, %v677_v30  ;;  %v940_v30 = vmul.f32 %v2578_v60, %v2324_v49 }
 0x972   :  { %v523_v6 = vmul.f32 %v2559_v1, %v3147_v31 }
 0x973   :  { %v955_v43 = vadd.f32 %v939_v39, %v816_v3  ;;  %v3152_v39 = vld [vmem:[#allocation46_spill] sm:$0xff] }
 0x974   :  { %v1297_v5 = vpop.f32.mrf.mxu0  ;;  %v539_v8 = vadd.f32 %v523_v6, %v3150_v62  ;;  %v524_v31 = vmul.f32 %v2559_v1, %v3152_v39  ;;  %v3158_v39 = vld [vmem:[#allocation87_spill] sm:$0xff] }
 0x975   :  { %v2662_v57 = vsub.f32 %v1297_v5, %v2404_v50  ;;  %v662_v50 = vmul.f32 %v2563_v28, %v3149_v17  ;;  %v3151_v5 = vld [vmem:[#allocation78_spill] sm:$0xff]  ;;  %v1094_v11 = vadd.f32 %v1078_v51, %v955_v43  ;;  %v3156_v43 = vld [vmem:[#allocation36_spill] sm:$0xff] }
 0x976   :  { %v801_v4 = vmul.f32 %v2567_v61, %v3151_v5  ;;  %v3153_v17 = vld [vmem:[#allocation94_spill] sm:$0xff]  ;;  %v3155_v5 = vld [vmem:[#allocation61_spill] sm:$0xff] }
 0x977   :  { %v1355_v12 = vmul.f32 %v2602_v10, %v2662_v57  ;;  %v678_v9 = vadd.f32 %v662_v50, %v539_v8  ;;  %v1079_v6 = vmul.f32 %v2584_v42, %v3153_v17  ;;  %v663_v51 = vmul.f32 %v2563_v28, %v3155_v5 }
 0x978   :  { %v1218_v50 = vmul.f32 %v2590_v2, %v2468_v36 }
 0x979   :  { %v2672_v16 = vadd.f32 %v1355_v12, %v1232_v22  ;;  %v1233_v22 = vadd.f32 %v1217_v20, %v1094_v11  ;;  %v817_v3 = vadd.f32 %v801_v4, %v678_v9  ;;  %v540_v20 = vadd.f32 %v524_v31, %v3156_v43 }
 0x97b   :  { %v679_v9 = vadd.f32 %v663_v51, %v540_v20  ;;  %v1219_v51 = vmul.f32 %v2590_v2, %v2462_v63  ;;  %v3163_v20 = vld [vmem:[#allocation77_spill] sm:$0xff] }
 0x97c   :  { %v1300_v14 = vpop.f32.mrf.mxu0 }
 0x97d   :  { %v1322_v40 = vsub.f32 %v1300_v14, %v3148_v56  ;;  %v956_v56 = vadd.f32 %v940_v30, %v817_v3  ;;  %v3157_v14 = vld [vmem:[#allocation76_spill] sm:$0xff]  ;;  %v3159_v30 = vld [vmem:[#allocation47_spill] sm:$0xff] }
 0x97e   :  { %v802_v8 = vmul.f32 %v2567_v61, %v3157_v14  ;;  %v525_v3 = vmul.f32 %v2559_v1, %v3159_v30  ;;  %v3161_v14 = vld [vmem:[#allocation62_spill] sm:$0xff] }
 0x97f   :  { %v1356_v12 = vmul.f32 %v2602_v10, %v1322_v40  ;;  %v1095_v11 = vadd.f32 %v1079_v6, %v956_v56  ;;  %v664_v6 = vmul.f32 %v2563_v28, %v3161_v14 }
 0x980   :  { %v818_v36 = vadd.f32 %v802_v8, %v679_v9 }
 0x981   :  { %v2689_v62 = vadd.f32 %v1356_v12, %v1233_v22  ;;  %v941_v22 = vmul.f32 %v2578_v60, %v3158_v39  ;;  %v1234_v12 = vadd.f32 %v1218_v50, %v1095_v11  ;;  %v3162_v50 = vld [vmem:[#allocation37_spill] sm:$0xff]  ;;  %v803_v11 = vmul.f32 %v2567_v61, %v3163_v20 }
 0x982   :  { %v1397_v20 = vpack.c.bf16 %v2662_v57, %v2642_v29  ;;  %v3168_v29 = vpack.c.bf16 %v2539_v27, %v2536_v25  ;;  %v1656_v57 = vld [vmem:[#allocation2] sm:$0xff] }
 0x983   :  { %3154 = vst [vmem:[#allocation30_spill] sm:$0xff] %v2689_v62  ;;  %v3160_v62 = vld [vmem:[#allocation92_spill] sm:$0xff] }
 0x984   :  { %v1302_v49 = vpop.f32.mrf.mxu0  ;;  %v1080_v31 = vmul.f32 %v2584_v42, %v3160_v62 }
 0x985   :  { %v1323_v4 = vsub.f32 %v1302_v49, %v3153_v17  ;;  %v957_v17 = vadd.f32 %v941_v22, %v818_v36  ;;  %v541_v49 = vadd.f32 %v525_v3, %v3162_v50  ;;  %v3164_v22 = vld [vmem:[#allocation93_spill] sm:$0xff]  ;;  %v1220_v50 = vmul.f32 %v2590_v2, %v2465_v7 }
 0x986   :  { %v1081_v14 = vmul.f32 %v2584_v42, %v3164_v22 }
 0x987   :  { %v1357_v5 = vmul.f32 %v2602_v10, %v1323_v4  ;;  %v1096_v39 = vadd.f32 %v1080_v31, %v957_v17  ;;  %v680_v9 = vadd.f32 %v664_v6, %v541_v49  ;;  %v1398_v49 = vpack.c.bf16 %v1323_v4, %v1322_v40  ;;  %v1659_v4 = vld [vmem:[#allocation2 + $0x18] sm:$0xff] }
 0x988   :  { %v3167_v40 = vpack.c.bf16 %v2547_v26, %v2544_v24 }
 0x989   :  { %v2706_v43 = vadd.f32 %v1357_v5, %v1234_v12  ;;  %v942_v12 = vmul.f32 %v2578_v60, %v2321_v45  ;;  %v1235_v5 = vadd.f32 %v1219_v51, %v1096_v39  ;;  %v819_v36 = vadd.f32 %v803_v11, %v680_v9  ;;  %v1660_v9 = vld [vmem:[#allocation2 + $0x28] sm:$0xff] }
 0x98a   :  { %v1396_v11 = vpack.c.bf16 %v2622_v48, %v2600_v55  ;;  %v3165_v39 = vpack.c.bf16 %v2576_v41, %v2573_v37  ;;  %v1657_v55 = vld [vmem:[#allocation2 + $0x8] sm:$0xff]  ;;  %v1658_v48 = vld [vmem:[#allocation2 + $0x10] sm:$0xff] }
 0x98b   :  { %v958_v3 = vadd.f32 %v942_v12, %v819_v36  ;;  %v1661_v12 = vld [vmem:[#allocation2 + $0x30] sm:$0xff] }
 0x98c   :  { %v1305_v56 = vpop.f32.mrf.mxu0 }
 0x98d   :  { %v1324_v8 = vsub.f32 %v1305_v56, %v3160_v62  ;;  %v1097_v17 = vadd.f32 %v1081_v14, %v958_v3  ;;  %v3171_v14 = vld [vmem:[#allocation20_spill] sm:$0xff] }
 0x98f   :  { %v1358_v30 = vmul.f32 %v2602_v10, %v1324_v8  ;;  %v1236_v6 = vadd.f32 %v1220_v50, %v1097_v17  ;;  %v3172_v50 = vld [vmem:[#allocation44_spill] sm:$0xff] }
 0x991   :  { %v2721_v63 = vadd.f32 %v1358_v30, %v1235_v5  ;;  %v1662_v5 = vld [vmem:[#allocation8] sm:$0xff] }
 0x992   :  { %v3169_v30 = vld [vmem:[#allocation19_spill] sm:$0xff] }
 0x993   :  { %v214_v36 = vmul.f32 %v1662_v5, %v3169_v30 }
 0x994   :  { %v1307_v31 = vpop.f32.mrf.mxu0 }
 0x995   :  { %v1325_v62 = vsub.f32 %v1307_v31, %v3164_v22  ;;  %v3170_v22 = vld [vmem:[#allocation27_spill] sm:$0xff]  ;;  %v3173_v31 = vld [vmem:[#allocation29_spill] sm:$0xff] }
 0x996   :  { %v232_v3 = vmul.f32 %v3171_v14, %v3170_v22  ;;  %v371_v17 = vmul.f32 %v3173_v31, %v3172_v50  ;;  %v1066_v50 = vmul.f32 %v2584_v42, %v2449_v58  ;;  %v1344_v58 = vmul.f32 %v2602_v10, %v2536_v25 }
 0x997   :  { %v1359_v45 = vmul.f32 %v2602_v10, %v1325_v62  ;;  %v1399_v51 = vpack.c.bf16 %v1325_v62, %v1324_v8  ;;  %v3166_v8 = vpack.c.bf16 %v2555_v18, %v2552_v52  ;;  %v1067_v25 = vmul.f32 %v2584_v42, %v2444_v53  ;;  %v3187_v53 = vld [vmem:[#allocation84_spill] sm:$0xff] }
 0x998   :  { %v248_v62 = vadd.f32 %v232_v3, %v214_v36  ;;  %v3179_v36 = vld [vmem:[#allocation59_spill] sm:$0xff] }
 0x999   :  { %v2727_v56 = vadd.f32 %v1359_v45, %v1236_v6  ;;  %1400 = vmatpush.bf16.msra.mxu1 %v1399_v51  ;;  %v3174_v6 = vld [vmem:[#allocation60_spill] sm:$0xff]  ;;  %v1663_v51 = vld [vmem:[#allocation2 + $0x38] sm:$0xff]  ;;  %v511_v22 = vmul.f32 %v2559_v1, %v3179_v36 }
 0x99a   :  { %v510_v45 = vmul.f32 %v2559_v1, %v3174_v6 }
 0x99d   :  { %1401 = vmatpush.bf16.msra.mxu1 %v1398_v49  ;;  %v3175_v49 = vld [vmem:[#allocation75_spill] sm:$0xff] }
 0x9a1   :  { %1402 = vmatpush.bf16.msra.mxu1 %v1397_v20  ;;  %v649_v20 = vmul.f32 %v2563_v28, %v3175_v49 }
 0x9a5   :  { %1403 = vmatpush.bf16.msra.mxu1 %v1396_v11  ;;  %v1664_v11 = vld [vmem:[#allocation8 + $0x8] sm:$0xff] }
 0x9a9   :  { %1404 = vmatpush.bf16.msra.mxu1 %v3165_v39  ;;  %v215_v39 = vmul.f32 %v1664_v11, %v3169_v30 }
 0x9ad   :  { %1405 = vmatpush.bf16.msra.mxu1 %v3166_v8  ;;  %v3176_v8 = vld [vmem:[#allocation28_spill] sm:$0xff] }
 0x9b1   :  { %1406 = vmatpush.bf16.msra.mxu1 %v3167_v40  ;;  %v233_v40 = vmul.f32 %v3171_v14, %v3176_v8 }
 0x9b3   :  { %v249_v5 = vadd.f32 %v233_v40, %v215_v39  ;;  %v3182_v39 = vld [vmem:[#allocation85_spill] sm:$0xff] }
 0x9b4   :  { %v789_v8 = vmul.f32 %v2567_v61, %v3182_v39 }
 0x9b5   :  { %1407 = vmatpush.bf16.msra.mxu1 %v3168_v29 }
 0x9b8   :  { %1408 = vmatmul.bf16.vlgmr.msra.gmra.mxu1 %v1656_v57  ;;  %v3177_v57 = vld [vmem:[#allocation86_spill] sm:$0xff] }
 0x9c8   :  { %1413 = vmatmul.bf16.gmra.mxu1 %v1657_v55  ;;  %v788_v55 = vmul.f32 %v2567_v61, %v3177_v57 }
 0x9d8   :  { %1418 = vmatmul.bf16.gmra.mxu1 %v1658_v48  ;;  %v3178_v48 = vld [vmem:[#allocation45_spill] sm:$0xff] }
 0x9e8   :  { %1423 = vmatmul.bf16.gmra.mxu1 %v1659_v4  ;;  %v372_v4 = vmul.f32 %v3173_v31, %v3178_v48  ;;  %v2781_v48 = vstv %s1624_s8 }
 0x9f8   :  { %1428 = vmatmul.bf16.gmra.mxu1 %v2529_v19  ;;  %v387_v19 = vadd.f32 %v371_v17, %v248_v62  ;;  %v388_v17 = vadd.f32 %v372_v4, %v249_v5  ;;  %v3180_v62 = vld [vmem:[#allocation74_spill] sm:$0xff] }
 0x9f9   :  { %v650_v6 = vmul.f32 %v2563_v28, %v3180_v62 }
 0x9fa   :  { %v526_v29 = vadd.f32 %v510_v45, %v387_v19  ;;  %v1665_v19 = vld [vmem:[#allocation8 + $0x10] sm:$0xff]  ;;  %v527_v11 = vadd.f32 %v511_v22, %v388_v17  ;;  %v3184_v22 = vld [vmem:[#allocation58_spill] sm:$0xff] }
 0x9fb   :  { %v216_v49 = vmul.f32 %v1665_v19, %v3169_v30  ;;  %v3185_v19 = vld [vmem:[#allocation73_spill] sm:$0xff] }
 0x9fc   :  { %v666_v4 = vadd.f32 %v650_v6, %v527_v11  ;;  %v651_v6 = vmul.f32 %v2563_v28, %v3185_v19 }
 0xa08   :  { %1433 = vmatmul.bf16.gmra.mxu1 %v1660_v9  ;;  %v665_v9 = vadd.f32 %v649_v20, %v526_v29  ;;  %v3183_v29 = vld [vmem:[#allocation42_spill] sm:$0xff] }
 0xa09   :  { %v373_v57 = vmul.f32 %v3173_v31, %v3183_v29  ;;  %v3188_v29 = vld [vmem:[#allocation43_spill] sm:$0xff] }
 0xa0a   :  { %v804_v3 = vadd.f32 %v788_v55, %v665_v9  ;;  %v928_v9 = vmul.f32 %v2578_v60, %v2372_v44  ;;  %v1206_v44 = vmul.f32 %v2590_v2, %v2516_v34 }
 0xa18   :  { %1438 = vmatmul.bf16.gmra.mxu1 %v1661_v12  ;;  %v927_v12 = vmul.f32 %v2578_v60, %v2377_v32  ;;  %v3181_v32 = vld [vmem:[#allocation25_spill] sm:$0xff] }
 0xa19   :  { %v234_v20 = vmul.f32 %v3171_v14, %v3181_v32 }
 0xa1a   :  { %v943_v45 = vadd.f32 %v927_v12, %v804_v3  ;;  %v512_v3 = vmul.f32 %v2559_v1, %v3184_v22  ;;  %v3189_v22 = vld [vmem:[#allocation57_spill] sm:$0xff] }
 0xa1b   :  { %v250_v36 = vadd.f32 %v234_v20, %v216_v49  ;;  %v3186_v20 = vld [vmem:[#allocation26_spill] sm:$0xff] }
 0xa1c   :  { %v1082_v40 = vadd.f32 %v1066_v50, %v943_v45  ;;  %v805_v50 = vadd.f32 %v789_v8, %v666_v4  ;;  %v235_v11 = vmul.f32 %v3171_v14, %v3186_v20  ;;  %v790_v8 = vmul.f32 %v2567_v61, %v3187_v53  ;;  %v3193_v53 = vld [vmem:[#allocation40_spill] sm:$0xff] }
 0xa1d   :  { %v389_v45 = vadd.f32 %v373_v57, %v250_v36  ;;  %v374_v57 = vmul.f32 %v3173_v31, %v3188_v29  ;;  %v930_v29 = vmul.f32 %v2578_v60, %v2364_v54  ;;  %v3196_v54 = vld [vmem:[#allocation108_spill] sm:$0xff] }
 0xa1e   :  { %v944_v32 = vadd.f32 %v928_v9, %v805_v50  ;;  %v929_v9 = vmul.f32 %v2578_v60, %v2369_v38  ;;  %v1207_v38 = vmul.f32 %v2590_v2, %v2513_v33 }
 0xa1f   :  { %v528_v39 = vadd.f32 %v512_v3, %v389_v45  ;;  %v513_v3 = vmul.f32 %v2559_v1, %v3189_v22  ;;  %v3190_v45 = vld [vmem:[#allocation72_spill] sm:$0xff] }
 0xa20   :  { %v652_v19 = vmul.f32 %v2563_v28, %v3190_v45 }
 0xa21   :  { %v667_v4 = vadd.f32 %v651_v6, %v528_v39  ;;  %v1346_v39 = vmul.f32 %v2602_v10, %v2544_v24  ;;  %v1069_v24 = vmul.f32 %v2584_v42, %v2436_v23  ;;  %v3198_v23 = vld [vmem:[#allocation82_spill] sm:$0xff] }
 0xa23   :  { %v806_v50 = vadd.f32 %v790_v8, %v667_v4  ;;  %v375_v8 = vmul.f32 %v3173_v31, %v3193_v53 }
 0xa25   :  { %v945_v6 = vadd.f32 %v929_v9, %v806_v50  ;;  %v3194_v9 = vld [vmem:[#allocation56_spill] sm:$0xff]  ;;  %v3195_v50 = vld [vmem:[#allocation71_spill] sm:$0xff] }
 0xa28   :  { %1443 = vmatmul.bf16.gmra.mxu1 %v1663_v51  ;;  %v1205_v51 = vmul.f32 %v2590_v2, %v2521_v35 }
 0xa2a   :  { %v1221_v12 = vadd.f32 %v1205_v51, %v1082_v40  ;;  %v1666_v51 = vld [vmem:[#allocation8 + $0x18] sm:$0xff]  ;;  %v1083_v40 = vadd.f32 %v1067_v25, %v944_v32  ;;  %v1667_v32 = vld [vmem:[#allocation8 + $0x20] sm:$0xff] }
 0xa2b   :  { %v217_v49 = vmul.f32 %v1666_v51, %v3169_v30 }
 0xa2c   :  { %v1360_v17 = vadd.f32 %v1344_v58, %v1221_v12  ;;  %v1345_v58 = vmul.f32 %v2602_v10, %v2539_v27  ;;  %v1222_v12 = vadd.f32 %v1206_v44, %v1083_v40  ;;  %v1068_v27 = vmul.f32 %v2584_v42, %v2441_v46  ;;  %v3192_v46 = vld [vmem:[#allocation83_spill] sm:$0xff] }
 0xa2d   :  { %v251_v36 = vadd.f32 %v235_v11, %v217_v49  ;;  %v218_v44 = vmul.f32 %v1667_v32, %v3169_v30  ;;  %v791_v20 = vmul.f32 %v2567_v61, %v3192_v46 }
 0xa2e   :  { %v1361_v25 = vadd.f32 %v1345_v58, %v1222_v12  ;;  %v1084_v11 = vadd.f32 %v1068_v27, %v945_v6  ;;  %v514_v12 = vmul.f32 %v2559_v1, %v3194_v9  ;;  %v653_v27 = vmul.f32 %v2563_v28, %v3195_v50  ;;  %v1669_v50 = vld [vmem:[#allocation8 + $0x30] sm:$0xff] }
 0xa35   :  { %v1409_v55 = vpop.f32.mrf.mxu1 }
 0xa36   :  { %v1449_v5 = vsub.f32 %v1409_v55, %v2521_v35 }
 0xa38   :  { %v1483_v62 = vmul.f32 %v2781_v48, %v1449_v5 }
 0xa3a   :  { %v1499_v35 = vadd.f32 %v1483_v62, %v1360_v17  ;;  %v390_v62 = vadd.f32 %v374_v57, %v251_v36  ;;  %v1223_v57 = vadd.f32 %v1207_v38, %v1084_v11 }
 0xa3c   :  { %1547 = vst [vmem:[#allocation9] sm:$0xff] %v1499_v35  ;;  %v3191_v35 = vld [vmem:[#allocation23_spill] sm:$0xff]  ;;  %v529_v49 = vadd.f32 %v513_v3, %v390_v62  ;;  %v1362_v36 = vadd.f32 %v1346_v39, %v1223_v57  ;;  %v1668_v62 = vld [vmem:[#allocation8 + $0x28] sm:$0xff] }
 0xa3d   :  { %v1411_v55 = vpop.f32.mrf.mxu1  ;;  %v236_v51 = vmul.f32 %v3171_v14, %v3191_v35  ;;  %v219_v45 = vmul.f32 %v1668_v62, %v3169_v30  ;;  %v3199_v35 = vld [vmem:[#allocation41_spill] sm:$0xff]  ;;  %v3202_v57 = vld [vmem:[#allocation99_spill] sm:$0xff] }
 0xa3e   :  { %v1450_v5 = vsub.f32 %v1411_v55, %v2516_v34  ;;  %v668_v58 = vadd.f32 %v652_v19, %v529_v49  ;;  %v3197_v19 = vld [vmem:[#allocation24_spill] sm:$0xff] }
 0xa3f   :  { %v252_v4 = vadd.f32 %v236_v51, %v218_v44  ;;  %v237_v6 = vmul.f32 %v3171_v14, %v3197_v19  ;;  %v1347_v44 = vmul.f32 %v2602_v10, %v2547_v26  ;;  %v376_v51 = vmul.f32 %v3173_v31, %v3199_v35 }
 0xa40   :  { %v1484_v17 = vmul.f32 %v2781_v48, %v1450_v5  ;;  %v807_v5 = vadd.f32 %v791_v20, %v668_v58  ;;  %v3200_v20 = vld [vmem:[#allocation91_spill] sm:$0xff]  ;;  %v1070_v26 = vmul.f32 %v2584_v42, %v3202_v57  ;;  %v1348_v19 = vmul.f32 %v2602_v10, %v2552_v52 }
 0xa41   :  { %v391_v3 = vadd.f32 %v375_v8, %v252_v4  ;;  %v931_v11 = vmul.f32 %v2578_v60, %v3200_v20  ;;  %v253_v8 = vadd.f32 %v237_v6, %v219_v45  ;;  %v3207_v6 = vld [vmem:[#allocation38_spill] sm:$0xff] }
 0xa42   :  { %v1500_v34 = vadd.f32 %v1484_v17, %v1361_v25  ;;  %v946_v25 = vadd.f32 %v930_v29, %v807_v5  ;;  %v1208_v17 = vmul.f32 %v2590_v2, %v3196_v54 }
 0xa43   :  { %v530_v38 = vadd.f32 %v514_v12, %v391_v3  ;;  %v392_v9 = vadd.f32 %v376_v51, %v253_v8  ;;  %v3203_v12 = vld [vmem:[#allocation70_spill] sm:$0xff] }
 0xa44   :  { %1548 = vst [vmem:[#allocation9 + $0x8] sm:$0xff] %v1500_v34  ;;  %v792_v34 = vmul.f32 %v2567_v61, %v3198_v23  ;;  %v1085_v32 = vadd.f32 %v1069_v24, %v946_v25  ;;  %v654_v5 = vmul.f32 %v2563_v28, %v3203_v12  ;;  %v3205_v25 = vld [vmem:[#allocation21_spill] sm:$0xff] }
 0xa45   :  { %v1414_v40 = vpop.f32.mrf.mxu1  ;;  %v669_v46 = vadd.f32 %v653_v27, %v530_v38  ;;  %v220_v27 = vmul.f32 %v1669_v50, %v3169_v30  ;;  %v377_v38 = vmul.f32 %v3173_v31, %v3207_v6  ;;  %v3217_v6 = vld [vmem:[#allocation53_spill] sm:$0xff] }
 0xa46   :  { %v1451_v55 = vsub.f32 %v1414_v40, %v2513_v33  ;;  %v1224_v39 = vadd.f32 %v1208_v17, %v1085_v32  ;;  %v3201_v40 = vld [vmem:[#allocation55_spill] sm:$0xff]  ;;  %v3208_v32 = vld [vmem:[#allocation90_spill] sm:$0xff] }
 0xa47   :  { %v515_v58 = vmul.f32 %v2559_v1, %v3201_v40  ;;  %v808_v29 = vadd.f32 %v792_v34, %v669_v46  ;;  %v3209_v46 = vld [vmem:[#allocation54_spill] sm:$0xff] }
 0xa48   :  { %v1485_v22 = vmul.f32 %v2781_v48, %v1451_v55  ;;  %v1363_v55 = vadd.f32 %v1347_v44, %v1224_v39  ;;  %v932_v44 = vmul.f32 %v2578_v60, %v3208_v32  ;;  %v516_v20 = vmul.f32 %v2559_v1, %v3209_v46  ;;  %v3210_v39 = vld [vmem:[#allocation98_spill] sm:$0xff]  ;;  %v3220_v46 = vld [vmem:[#allocation105_spill] sm:$0xff] }
 0xa49   :  { %v947_v24 = vadd.f32 %v931_v11, %v808_v29  ;;  %v531_v17 = vadd.f32 %v515_v58, %v392_v9  ;;  %v1071_v52 = vmul.f32 %v2584_v42, %v3210_v39  ;;  %v3211_v58 = vld [vmem:[#allocation69_spill] sm:$0xff]  ;;  %v1670_v9 = vld [vmem:[#allocation8 + $0x38] sm:$0xff] }
 0xa4a   :  { %v1501_v33 = vadd.f32 %v1485_v22, %v1362_v36  ;;  %v3204_v36 = vld [vmem:[#allocation107_spill] sm:$0xff]  ;;  %v655_v29 = vmul.f32 %v2563_v28, %v3211_v58  ;;  %v221_v12 = vmul.f32 %v1670_v9, %v3169_v30 }
 0xa4b   :  { %v1209_v22 = vmul.f32 %v2590_v2, %v3204_v36  ;;  %v1086_v45 = vadd.f32 %v1070_v26, %v947_v24  ;;  %v670_v34 = vadd.f32 %v654_v5, %v531_v17  ;;  %v3212_v26 = vld [vmem:[#allocation106_spill] sm:$0xff] }
 0xa4c   :  { %1549 = vst [vmem:[#allocation9 + $0x10] sm:$0xff] %v1501_v33  ;;  %v3206_v33 = vld [vmem:[#allocation81_spill] sm:$0xff]  ;;  %v3213_v5 = vld [vmem:[#allocation22_spill] sm:$0xff] }
 0xa4d   :  { %v1416_v49 = vpop.f32.mrf.mxu1  ;;  %v793_v62 = vmul.f32 %v2567_v61, %v3206_v33  ;;  %v1225_v35 = vadd.f32 %v1209_v22, %v1086_v45  ;;  %v239_v24 = vmul.f32 %v3171_v14, %v3213_v5  ;;  %v3214_v22 = vld [vmem:[#allocation80_spill] sm:$0xff] }
 0xa4e   :  { %v1452_v53 = vsub.f32 %v1416_v49, %v3196_v54  ;;  %v238_v54 = vmul.f32 %v3171_v14, %v3205_v25  ;;  %v3215_v25 = vld [vmem:[#allocation39_spill] sm:$0xff] }
 0xa4f   :  { %v809_v11 = vadd.f32 %v793_v62, %v670_v34  ;;  %v3216_v62 = vld [vmem:[#allocation89_spill] sm:$0xff] }
 0xa50   :  { %v1486_v4 = vmul.f32 %v2781_v48, %v1452_v53  ;;  %v254_v49 = vadd.f32 %v238_v54, %v220_v27  ;;  %v1364_v53 = vadd.f32 %v1348_v19, %v1225_v35  ;;  %v1349_v27 = vmul.f32 %v2602_v10, %v2555_v18  ;;  %v3218_v34 = vld [vmem:[#allocation97_spill] sm:$0xff]  ;;  %v3219_v35 = vld [vmem:[#allocation68_spill] sm:$0xff] }
 0xa51   :  { %v948_v57 = vadd.f32 %v932_v44, %v809_v11  ;;  %v378_v54 = vmul.f32 %v3173_v31, %v3215_v25  ;;  %v933_v30 = vmul.f32 %v2578_v60, %v3216_v62  ;;  %v255_v19 = vadd.f32 %v239_v24, %v221_v12  ;;  %v3224_v24 = vld [vmem:[#allocation104_spill] sm:$0xff] }
 0xa52   :  { %v1502_v3 = vadd.f32 %v1486_v4, %v1363_v55  ;;  %v393_v40 = vadd.f32 %v377_v38, %v254_v49  ;;  %v1210_v55 = vmul.f32 %v2590_v2, %v3212_v26  ;;  %v517_v38 = vmul.f32 %v2559_v1, %v3217_v6 }
 0xa53   :  { %v1087_v50 = vadd.f32 %v1071_v52, %v948_v57  ;;  %v1072_v18 = vmul.f32 %v2584_v42, %v3218_v34  ;;  %v394_v31 = vadd.f32 %v378_v54, %v255_v19  ;;  %v3221_v52 = vld [vmem:[#allocation79_spill] sm:$0xff] }
 0xa54   :  { %1550 = vst [vmem:[#allocation9 + $0x18] sm:$0xff] %v1502_v3  ;;  %v794_v3 = vmul.f32 %v2567_v61, %v3214_v22  ;;  %v795_v1 = vmul.f32 %v2567_v61, %v3221_v52 }
 0xa55   :  { %v1419_v23 = vpop.f32.mrf.mxu1  ;;  %v1226_v45 = vadd.f32 %v1210_v55, %v1087_v50  ;;  %v533_v39 = vadd.f32 %v517_v38, %v394_v31 }
 0xa56   :  { %v1453_v51 = vsub.f32 %v1419_v23, %v3204_v36  ;;  %v532_v36 = vadd.f32 %v516_v20, %v393_v40  ;;  %v1211_v20 = vmul.f32 %v2590_v2, %v3220_v46 }
 0xa57   :  { %v1365_v32 = vadd.f32 %v1349_v27, %v1226_v45 }
 0xa58   :  { %v1487_v8 = vmul.f32 %v2781_v48, %v1453_v51  ;;  %v671_v33 = vadd.f32 %v655_v29, %v532_v36  ;;  %v656_v51 = vmul.f32 %v2563_v28, %v3219_v35  ;;  %v3222_v29 = vld [vmem:[#allocation88_spill] sm:$0xff] }
 0xa59   :  { %v934_v57 = vmul.f32 %v2578_v60, %v3222_v29 }
 0xa5a   :  { %v1503_v4 = vadd.f32 %v1487_v8, %v1364_v53  ;;  %v810_v23 = vadd.f32 %v794_v3, %v671_v33  ;;  %v1350_v8 = vmul.f32 %v2602_v10, %v2573_v37  ;;  %v672_v58 = vadd.f32 %v656_v51, %v533_v39  ;;  %v3225_v33 = vld [vmem:[#allocation103_spill] sm:$0xff]  ;;  %v3227_v51 = vld [vmem:[#allocation30_spill] sm:$0xff]  ;;  %v3229_v39 = vld [vmem:[#allocation100_spill] sm:$0xff] }
 0xa5b   :  { %v1212_v37 = vmul.f32 %v2590_v2, %v3224_v24  ;;  %v1351_v3 = vmul.f32 %v2602_v10, %v2576_v41  ;;  %v3226_v41 = vld [vmem:[#allocation102_spill] sm:$0xff] }
 0xa5c   :  { %1551 = vst [vmem:[#allocation9 + $0x20] sm:$0xff] %v1503_v4  ;;  %v949_v49 = vadd.f32 %v933_v30, %v810_v23  ;;  %v811_v55 = vadd.f32 %v795_v1, %v672_v58  ;;  %v3223_v4 = vld [vmem:[#allocation96_spill] sm:$0xff] }
 0xa5d   :  { %v1421_v17 = vpop.f32.mrf.mxu1  ;;  %v1073_v9 = vmul.f32 %v2584_v42, %v3223_v4 }
 0xa5e   :  { %v1454_v14 = vsub.f32 %v1421_v17, %v3212_v26  ;;  %v1088_v53 = vadd.f32 %v1072_v18, %v949_v49  ;;  %v950_v5 = vadd.f32 %v934_v57, %v811_v55 }
 0xa60   :  { %v1488_v44 = vmul.f32 %v2781_v48, %v1454_v14  ;;  %v1227_v28 = vadd.f32 %v1211_v20, %v1088_v53  ;;  %v1089_v22 = vadd.f32 %v1073_v9, %v950_v5 }
 0xa62   :  { %v1504_v11 = vadd.f32 %v1488_v44, %v1365_v32  ;;  %v1366_v12 = vadd.f32 %v1350_v8, %v1227_v28  ;;  %v1228_v50 = vadd.f32 %v1212_v37, %v1089_v22 }
 0xa64   :  { %1552 = vst [vmem:[#allocation9 + $0x28] sm:$0xff] %v1504_v11  ;;  %v1367_v25 = vadd.f32 %v1351_v3, %v1228_v50 }
 0xa65   :  { %v1424_v40 = vpop.f32.mrf.mxu1 }
 0xa66   :  { %v1455_v26 = vsub.f32 %v1424_v40, %v3220_v46  ;;  %v3228_v46 = vld [vmem:[#allocation101_spill] sm:$0xff] }
 0xa68   :  { %v1489_v61 = vmul.f32 %v2781_v48, %v1455_v26 }
 0xa6a   :  { %v1505_v36 = vadd.f32 %v1489_v61, %v1366_v12 }
 0xa6c   :  { %1553 = vst [vmem:[#allocation9 + $0x30] sm:$0xff] %v1505_v36 }
 0xa6d   :  { %v1426_v60 = vpop.f32.mrf.mxu1 }
 0xa6e   :  { %v1456_v27 = vsub.f32 %v1426_v60, %v3224_v24 }
 0xa70   :  { %v1490_v42 = vmul.f32 %v2781_v48, %v1456_v27 }
 0xa72   :  { %v1506_v54 = vadd.f32 %v1490_v42, %v1367_v25 }
 0xa74   :  { %1554 = vst [vmem:[#allocation9 + $0x38] sm:$0xff] %v1506_v54 }
 0xa75   :  { %v1429_v17 = vpop.f32.mrf.mxu1 }
 0xa76   :  { %v1457_v62 = vsub.f32 %v1429_v17, %v3225_v33 }
 0xa78   :  { %v1491_v2 = vmul.f32 %v2781_v48, %v1457_v62 }
 0xa7a   :  { %v1507_v30 = vadd.f32 %v1491_v2, %v2612_v21 }
 0xa7c   :  { %1555 = vst [vmem:[#allocation9 + $0x40] sm:$0xff] %v1507_v30 }
 0xa7d   :  { %v1431_v45 = vpop.f32.mrf.mxu1 }
 0xa7e   :  { %v1458_v10 = vsub.f32 %v1431_v45, %v3226_v41 }
 0xa80   :  { %v1492_v14 = vmul.f32 %v2781_v48, %v1458_v10 }
 0xa82   :  { %v1508_v19 = vadd.f32 %v1492_v14, %v2632_v0 }
 0xa84   :  { %1556 = vst [vmem:[#allocation9 + $0x48] sm:$0xff] %v1508_v19 }
 0xa85   :  { %v1434_v6 = vpop.f32.mrf.mxu1 }
 0xa86   :  { %v1459_v38 = vsub.f32 %v1434_v6, %v2481_v47 }
 0xa88   :  { %v1493_v23 = vmul.f32 %v2781_v48, %v1459_v38 }
 0xa8a   :  { %v1509_v34 = vadd.f32 %v1493_v23, %v2652_v15 }
 0xa8c   :  { %1557 = vst [vmem:[#allocation9 + $0x50] sm:$0xff] %v1509_v34 }
 0xa8d   :  { %v1436_v18 = vpop.f32.mrf.mxu1 }
 0xa8e   :  { %v1460_v21 = vsub.f32 %v1436_v18, %v2476_v59 }
 0xa90   :  { %v1494_v32 = vmul.f32 %v2781_v48, %v1460_v21 }
 0xa92   :  { %v1510_v44 = vadd.f32 %v1494_v32, %v2672_v16 }
 0xa94   :  { %1558 = vst [vmem:[#allocation9 + $0x58] sm:$0xff] %v1510_v44 }
 0xa95   :  { %v1439_v31 = vpop.f32.mrf.mxu1 }
 0xa96   :  { %v1461_v0 = vsub.f32 %v1439_v31, %v2473_v13 }
 0xa98   :  { %v1495_v35 = vmul.f32 %v2781_v48, %v1461_v0 }
 0xa9a   :  { %v1511_v47 = vadd.f32 %v1495_v35, %v3227_v51 }
 0xa9c   :  { %1559 = vst [vmem:[#allocation9 + $0x60] sm:$0xff] %v1511_v47 }
 0xa9d   :  { %v1441_v49 = vpop.f32.mrf.mxu1 }
 0xa9e   :  { %v1462_v15 = vsub.f32 %v1441_v49, %v3228_v46 }
 0xaa0   :  { %v1496_v20 = vmul.f32 %v2781_v48, %v1462_v15 }
 0xaa2   :  { %v1512_v59 = vadd.f32 %v1496_v20, %v2706_v43 }
 0xaa4   :  { %1560 = vst [vmem:[#allocation9 + $0x68] sm:$0xff] %v1512_v59 }
 0xaa5   :  { %v1444_v11 = vpop.f32.mrf.mxu1 }
 0xaa6   :  { %v1463_v16 = vsub.f32 %v1444_v11, %v3229_v39 }
 0xaa8   :  { %v1497_v52 = vmul.f32 %v2781_v48, %v1463_v16 }
 0xaaa   :  { %v1513_v13 = vadd.f32 %v1497_v52, %v2721_v63 }
 0xaac   :  { %1561 = vst [vmem:[#allocation9 + $0x70] sm:$0xff] %v1513_v13 }
 0xaad   :  { %v1446_v1 = vpop.f32.mrf.mxu1 }
 0xaae   :  { %v1464_v53 = vsub.f32 %v1446_v1, %v2465_v7 }
 0xab0   :  { %v1498_v43 = vmul.f32 %v2781_v48, %v1464_v53 }
 0xab2   :  { %v1514_v8 = vadd.f32 %v1498_v43, %v2727_v56 }
 0xab4   :  { %1562 = vst [vmem:[#allocation9 + $0x78] sm:$0xff] %v1514_v8 }
 0xab5   :  { %1575 = dma.vmem_to_hbm [thread:$0]  %s1568_s10, 2048, %s1570_s13, [#allocation6], %s1765_s21, %s1765_s21, %s1766_s22  }
 0xab6   :  { %1761 = dma.done.wait [#allocation6], 2048  }
 0xab7   :  { %1762 = vsyncadd [#allocation6], 4294965248 }
 0xab8   :  { %1580 = vsyncpa [#allocation5], 1 }
 0xab9   :  { %1581 = vsyncpa [#allocation6], 1 }
 0xaba   :  { %1582 = vsyncpa [#allocation7], 1 }

</bundles_post_ra>
